<compile_context>
chip_gen: v5e
topology: v5e:2x2
jax: 0.10.0
libtpu: 0.0.40
codegen_flags: <defaults>
</compile_context>

<pallas_src>
import math
import functools

import jax
import jax.numpy as jnp
from jax.experimental import pallas as pl
from jax.experimental.pallas import tpu as pltpu


def _layer_norm(x, gamma, beta, eps=1e-5):
    mean = jnp.mean(x, axis=-1, keepdims=True)
    var = jnp.mean((x - mean) ** 2, axis=-1, keepdims=True)
    return (x - mean) * jax.lax.rsqrt(var + eps) * gamma + beta


def att_kernel(tokq_ref, edge_ref, mask_ref, kexp_ref, vexp_ref,
               wq_ref, bq_ref, mek_ref, mev_ref,
               wd_ref, g1_ref, b1_ref, g2_ref, b2_ref,
               out_ref, *, num_heads, head_dim):
    f32 = jnp.float32
    bf16 = jnp.bfloat16
    nh, hd = num_heads, head_dim
    TI = tokq_ref.shape[1]
    H = tokq_ref.shape[2]
    S = mask_ref.shape[2]

    x_tile = tokq_ref[0]                       # (TI, H)  query rows + residual
    mask0 = mask_ref[0] == 0.0                 # (TI, S)  hoisted compare
    edge_bf = edge_ref[0]                      # (TI, S, H) bf16 — never upcast to f32

    # Query projection for this tile (tiny matmul; weights stay VMEM-resident across the grid).
    q = jnp.dot(x_tile, wq_ref[...], preferred_element_type=f32) + bq_ref[...]

    # --- token-key scores: ONE lane-dense 2-D MXU matmul against the VMEM-resident,
    #     head-block-masked K expansion (built once per call in the wrapper). ---
    base = jnp.dot(q, kexp_ref[0], preferred_element_type=f32).reshape(TI, nh, S)

    # --- edge-key scores without materializing ek:
    #       r[i, h, c]   = sum_d q[i, h*hd + d] * Wek[c, h*hd + d]   (M_ek = head-masked Wek)
    #       esc[i, h, j] = sum_c r[i, h, c] * edge[i, j, c]          (bf16 ops, f32 accumulate)
    r = jnp.dot(q, mek_ref[...], preferred_element_type=f32).reshape(TI, nh, H)
    esc = jnp.einsum('ihc,ijc->ihj', r.astype(bf16), edge_bf,
                     preferred_element_type=f32)

    scale = f32(1.0 / math.sqrt(hd))
    scores = (base + esc) * scale
    # -1e6 (not -inf) matches the reference; fully-masked rows give a near-uniform softmax.
    scores = jnp.where(mask0[:, None, :], f32(-1e6), scores)

    m = jnp.max(scores, axis=-1, keepdims=True)
    e = jnp.exp(scores - m)
    denom = jnp.sum(e, axis=-1, keepdims=True)
    inv = pl.reciprocal(denom, approx=True)
    inv = inv * (2.0 - denom * inv)   # one Newton step: keeps sum(probs)==1 at ~f32 accuracy,
                                      # which the bek/bev bias fold relies on.  Do not drop.
    probs = e * inv                   # (TI, nh, S) f32

    # --- token-value context: ONE 2-D MXU matmul against the resident head-masked V expansion ---
    ctx = jnp.dot(probs.reshape(TI, nh * S), vexp_ref[0], preferred_element_type=f32)

    # --- edge-value context without materializing ev:
    #       pe[i, h, c] = sum_j probs[i, h, j] * edge[i, j, c]       (bf16 ops, f32 accumulate)
    #       ctx_e[i, :] = (pe reshaped) @ M_ev                       (M_ev = head-masked Wev)
    pe = jnp.einsum('ihj,ijc->ihc', probs.astype(bf16), edge_bf,
                    preferred_element_type=f32)
    ctx = ctx + jnp.dot(pe.reshape(TI, nh * H), mev_ref[...], preferred_element_type=f32)

    out1 = _layer_norm(x_tile + ctx, g1_ref[...], b1_ref[...])
    dense = jnp.dot(out1, wd_ref[...], preferred_element_type=f32)
    out2 = _layer_norm(out1 + dense, g2_ref[...], b2_ref[...])
    out_ref[0] = out2.astype(out_ref.dtype)


def _vmem_capacity_bytes():
    """Physical VMEM of the current TPU generation (v7x: 64 MiB, v5e/v6e: 128 MiB)."""
    try:
        cap = getattr(pltpu.get_tpu_info(), "vmem_capacity_bytes", None)
        if cap:
            return int(cap)
    except Exception:
        pass
    return 64 << 20   # conservative default (v7x-sized)


def _pick_tile_i(S, H, budget_bytes):
    """Largest divisor of S (preferring multiples of 128, then 8) whose bf16 edge slab fits."""
    def fits(t):
        return t * S * H * 2 <= budget_bytes
    if fits(S):
        return S
    for step in (128, 8):
        best = 0
        for t in range(step, S + 1, step):
            if S % t == 0 and fits(t):
                best = t
        if best:
            return best
    best = 1
    for t in range(1, S + 1):      # last resort: any divisor
        if S % t == 0 and fits(t):
            best = t
    return best


def att_forward(token, edge, mask, params, *, num_heads, tile_i=None):
    B, S, H = token.shape
    nh = num_heads
    hd = H // nh
    f32 = jnp.float32

    # The S*S*H edge tensor is the dominant HBM stream: it should arrive in bf16 from the
    # producer.  Only fall back to a standalone cast pass if handed something wider.
    if edge.dtype != jnp.bfloat16:
        edge = edge.astype(jnp.bfloat16)   # TODO(synk): fuse this cast into the edge producer.

    vmem_cap = _vmem_capacity_bytes()
    if tile_i is None:
        # per-buffer budget ~1/8 of physical VMEM (8 MiB on v7x, 16 MiB on v5e/v6e)
        tile_i = _pick_tile_i(S, H, budget_bytes=max(vmem_cap // 8, 4 << 20))
    assert S % tile_i == 0, f"tile_i={tile_i} must divide S={S}"
    n_i = S // tile_i

    # ---- i-invariant prep, hoisted out of the grid body (runs once per call, XLA side) ----
    # edge_k / edge_v biases fold exactly into the K / V biases because softmax rows sum to 1.
    k = token @ params["wk"] + (params["bk"] + params["bek"])        # (B, S, H)
    v = token @ params["wv"] + (params["bv"] + params["bev"])        # (B, S, H)
    hm = (jnp.arange(H)[:, None] // hd == jnp.arange(nh)[None, :]).astype(f32)   # (H, nh)
    # kexp[b, D, h*S + j] = k[b, j, D] if channel D belongs to head h else 0
    kexp = (jnp.swapaxes(k, 1, 2)[:, :, None, :] * hm[None, :, :, None]).reshape(B, H, nh * S)
    # vexp[b, h*S + j, D] = v[b, j, D] if channel D belongs to head h else 0
    vexp = (v[:, None, :, :] * hm.T[None, :, None, :]).reshape(B, nh * S, H)
    # M_ek[D, h*H + c] = Wek[c, D] if channel D belongs to head h else 0
    m_ek = (params["wek"].T[:, None, :] * hm[:, :, None]).reshape(H, nh * H)
    # M_ev[h*H + c, D] = Wev[c, D] if channel D belongs to head h else 0
    m_ev = (params["wev"][None, :, :] * hm.T[:, None, :]).reshape(nh * H, H)

    kernel = functools.partial(att_kernel, num_heads=nh, head_dim=hd)

    def full2d(shape):
        return pl.BlockSpec(shape, lambda b, i: (0, 0))

    # VMEM sizing: double-buffered bf16 edge slab + resident kexp/vexp + softmax temporaries.
    edge_tile_bytes = tile_i * S * H * 2
    resident_bytes = 2 * nh * S * H * 4                 # kexp + vexp (f32, resident per batch)
    temps_bytes = 6 * tile_i * nh * S * 4               # scores / exp / probs (+ bf16 copies)
    need = 2 * edge_tile_bytes + resident_bytes + temps_bytes + (8 << 20)
    vmem_limit = int(min(max(need, 32 << 20), (vmem_cap * 4) // 5))

    flops = int(4 * B * S * S * H * nh        # esc + pe edge einsums
                + 4 * B * S * S * H * nh      # base + ctx against head-masked expansions
                + 4 * B * S * H * nh * H      # r projection + edge-context @ M_ev
                + 4 * B * S * H * H)          # q projection + dense
    cost = pl.CostEstimate(
        flops=flops,
        transcendentals=int(B * S * nh * S),
        bytes_accessed=int(edge.size * 2 + token.size * 4 + mask.size * 4
                           + 2 * B * nh * S * H * 4 + B * S * H * 4))

    return pl.pallas_call(
        kernel,
        out_shape=jax.ShapeDtypeStruct((B, S, H), jnp.float32),
        grid=(B, n_i),
        in_specs=[
            pl.BlockSpec((1, tile_i, H), lambda b, i: (b, i, 0)),          # token (query tile)
            pl.BlockSpec((1, tile_i, S, H), lambda b, i: (b, i, 0, 0)),    # edge slab (bf16)
            pl.BlockSpec((1, tile_i, S), lambda b, i: (b, i, 0)),          # mask slab
            pl.BlockSpec((1, H, nh * S), lambda b, i: (b, 0, 0)),          # kexp (resident over i)
            pl.BlockSpec((1, nh * S, H), lambda b, i: (b, 0, 0)),          # vexp (resident over i)
            full2d((H, H)), full2d((1, H)),                                # wq, bq
            full2d((H, nh * H)), full2d((nh * H, H)),                      # M_ek, M_ev
            full2d((H, H)),                                                # dense (bias=False)
            full2d((1, H)), full2d((1, H)),                                # LayerNorm gamma, beta
            full2d((1, H)), full2d((1, H)),                                # LayerNorm_2 gamma, beta
        ],
        out_specs=pl.BlockSpec((1, tile_i, H), lambda b, i: (b, i, 0)),
        compiler_params=pltpu.CompilerParams(
            dimension_semantics=("parallel", "parallel"),
            vmem_limit_bytes=vmem_limit),
        cost_estimate=cost,
    )(token, edge, mask, kexp, vexp,
      params["wq"], params["bq"], m_ek, m_ev,
      params["wd"], params["g1"], params["b1"], params["g2"], params["b2"])


def ref_forward(token, edge, mask, p, *, num_heads):
    # Pure-JAX mirror of the PyTorch forward (eval mode), for correctness checking.
    B, S, H = token.shape
    hd = H // num_heads
    q = token @ p["wq"] + p["bq"]
    k = token @ p["wk"] + p["bk"]
    v = token @ p["wv"] + p["bv"]
    ek = edge @ p["wek"] + p["bek"]
    ev = edge @ p["wev"] + p["bev"]
    q = q.reshape(B, S, num_heads, hd)
    k = k.reshape(B, S, num_heads, hd)
    v = v.reshape(B, S, num_heads, hd)
    ek = ek.reshape(B, S, S, num_heads, hd)
    ev = ev.reshape(B, S, S, num_heads, hd)
    keyl = k[:, None] + ek                     # [b, i, j, h, d]
    vall = v[:, None] + ev
    scores = jnp.einsum('bihd,bijhd->bhij', q, keyl) / math.sqrt(hd)
    scores = jnp.where(mask[:, None] == 0, -1e6, scores)
    probs = jax.nn.softmax(scores, axis=-1)
    ctx = jnp.einsum('bhij,bijhd->bihd', probs, vall).reshape(B, S, H)

    def ln(x, g, b, eps=1e-5):
        m = x.mean(-1, keepdims=True)
        var = ((x - m) ** 2).mean(-1, keepdims=True)
        return (x - m) / jnp.sqrt(var + eps) * g + b

    out1 = ln(token + ctx, p["g1"], p["b1"])
    out2 = ln(out1 + out1 @ p["wd"], p["g2"], p["b2"])
    return out2


if __name__ == "__main__":
    B, S, H, NH = 2, 8, 32, 4
    key = jax.random.PRNGKey(0)
    ks = jax.random.split(key, 16)

    def w(k):
        return jax.random.normal(k, (H, H), jnp.float32) * 0.05

    def b(k):
        return jax.random.normal(k, (1, H), jnp.float32) * 0.02

    params = dict(
        wq=w(ks[0]), bq=b(ks[1]),
        wk=w(ks[2]), bk=b(ks[3]),
        wv=w(ks[4]), bv=b(ks[5]),
        wek=w(ks[6]), bek=b(ks[7]),
        wev=w(ks[8]), bev=b(ks[9]),
        wd=w(ks[10]),
        g1=jnp.ones((1, H), jnp.float32), b1=jnp.zeros((1, H), jnp.float32),
        g2=jnp.ones((1, H), jnp.float32), b2=jnp.zeros((1, H), jnp.float32),
    )

    token = jax.random.normal(ks[11], (B, S, H), jnp.float32)
    edge_f32 = jax.random.normal(ks[12], (B, S, S, H), jnp.float32) * 0.1
    # "Producer" supplies the dominant edge tensor already in bf16 (no extra cast pass in the
    # wrapper's hot path); the reference sees the identical (bf16-rounded) edge values.
    edge = edge_f32.astype(jnp.bfloat16)
    mask = (jax.random.uniform(ks[13], (B, S, S)) > 0.3).astype(jnp.float32)
    mask = jnp.maximum(mask, jnp.eye(S, dtype=jnp.float32)[None])   # keep diagonal unmasked

    out = att_forward(token, edge, mask, params, num_heads=NH)
    out = jax.block_until_ready(out)

    ref = ref_forward(token, edge.astype(jnp.float32), mask, params, num_heads=NH)
    assert out.shape == (B, S, H)
    err = float(jnp.max(jnp.abs(out - ref)))
    # Tolerance accounts for bf16 edge-path operands (r / probs / edge); accumulation is f32.
    assert jnp.allclose(out, ref, atol=3e-3, rtol=3e-3), f"max abs err {err}"
    print("KERNEL_OK")
</pallas_src>

<mosaic_0001>
module attributes {stable_mosaic.version = 11 : i64} {
  func.func @att_kernel(%arg0: i32, %arg1: i32, %arg2: memref<1x8x32xf32, #tpu.memory_space<vmem>>, %arg3: memref<1x8x8x32xbf16, #tpu.memory_space<vmem>>, %arg4: memref<1x8x8xf32, #tpu.memory_space<vmem>>, %arg5: memref<1x32x32xf32, #tpu.memory_space<vmem>>, %arg6: memref<1x32x32xf32, #tpu.memory_space<vmem>>, %arg7: memref<32x32xf32, #tpu.memory_space<vmem>>, %arg8: memref<1x32xf32, #tpu.memory_space<vmem>>, %arg9: memref<32x128xf32, #tpu.memory_space<vmem>>, %arg10: memref<128x32xf32, #tpu.memory_space<vmem>>, %arg11: memref<32x32xf32, #tpu.memory_space<vmem>>, %arg12: memref<1x32xf32, #tpu.memory_space<vmem>>, %arg13: memref<1x32xf32, #tpu.memory_space<vmem>>, %arg14: memref<1x32xf32, #tpu.memory_space<vmem>>, %arg15: memref<1x32xf32, #tpu.memory_space<vmem>>, %arg16: memref<1x8x32xf32, #tpu.memory_space<vmem>>) attributes {dimension_semantics = [#tpu.dimension_semantics<parallel>, #tpu.dimension_semantics<parallel>], iteration_bounds = array<i64: 2, 1>, scalar_prefetch = 0 : i64, scratch_operands = 0 : i64, tpu.core_type = #tpu.core_type<tc>, window_params = [{transform_indices = @transform_0, window_bounds = array<i64: 1, 8, 32>}, {transform_indices = @transform_1, window_bounds = array<i64: 1, 8, 8, 32>}, {transform_indices = @transform_2, window_bounds = array<i64: 1, 8, 8>}, {transform_indices = @transform_3, window_bounds = array<i64: 1, 32, 32>}, {transform_indices = @transform_4, window_bounds = array<i64: 1, 32, 32>}, {pipeline_mode = #tpu.pipeline_mode<synchronous>, transform_indices = @transform_5, window_bounds = array<i64: 32, 32>}, {pipeline_mode = #tpu.pipeline_mode<synchronous>, transform_indices = @transform_6, window_bounds = array<i64: 1, 32>}, {pipeline_mode = #tpu.pipeline_mode<synchronous>, transform_indices = @transform_7, window_bounds = array<i64: 32, 128>}, {pipeline_mode = #tpu.pipeline_mode<synchronous>, transform_indices = @transform_8, window_bounds = array<i64: 128, 32>}, {pipeline_mode = #tpu.pipeline_mode<synchronous>, transform_indices = @transform_9, window_bounds = array<i64: 32, 32>}, {pipeline_mode = #tpu.pipeline_mode<synchronous>, transform_indices = @transform_10, window_bounds = array<i64: 1, 32>}, {pipeline_mode = #tpu.pipeline_mode<synchronous>, transform_indices = @transform_11, window_bounds = array<i64: 1, 32>}, {pipeline_mode = #tpu.pipeline_mode<synchronous>, transform_indices = @transform_12, window_bounds = array<i64: 1, 32>}, {pipeline_mode = #tpu.pipeline_mode<synchronous>, transform_indices = @transform_13, window_bounds = array<i64: 1, 32>}, {transform_indices = @transform_14, window_bounds = array<i64: 1, 8, 32>}]} {
    %c0 = arith.constant 0 : index
    %c0_0 = arith.constant 0 : index
    %c0_1 = arith.constant 0 : index
    %0 = vector.load %arg2[%c0, %c0_0, %c0_1] : memref<1x8x32xf32, #tpu.memory_space<vmem>>, vector<1x8x32xf32>
    %1 = vector.shape_cast %0 : vector<1x8x32xf32> to vector<8x32xf32>
    %c0_2 = arith.constant 0 : index
    %c0_3 = arith.constant 0 : index
    %c0_4 = arith.constant 0 : index
    %2 = vector.load %arg4[%c0_2, %c0_3, %c0_4] : memref<1x8x8xf32, #tpu.memory_space<vmem>>, vector<1x8x8xf32>
    %3 = vector.shape_cast %2 : vector<1x8x8xf32> to vector<8x8xf32>
    %cst = arith.constant 0.000000e+00 : f32
    %4 = vector.broadcast %cst : f32 to vector<8x8xf32>
    %5 = arith.cmpf oeq, %3, %4 : vector<8x8xf32>
    %c0_5 = arith.constant 0 : index
    %c0_6 = arith.constant 0 : index
    %c0_7 = arith.constant 0 : index
    %c0_8 = arith.constant 0 : index
    %6 = vector.load %arg3[%c0_5, %c0_6, %c0_7, %c0_8] : memref<1x8x8x32xbf16, #tpu.memory_space<vmem>>, vector<1x8x8x32xbf16>
    %7 = vector.shape_cast %6 : vector<1x8x8x32xbf16> to vector<8x8x32xbf16>
    %c0_9 = arith.constant 0 : index
    %c0_10 = arith.constant 0 : index
    %8 = vector.load %arg7[%c0_9, %c0_10] : memref<32x32xf32, #tpu.memory_space<vmem>>, vector<32x32xf32>
    %cst_11 = arith.constant dense<0.000000e+00> : vector<8x32xf32>
    %9 = tpu.matmul %1, %8, %cst_11 {dimension_numbers = #tpu.dot_dimension_numbers<[1], [0], [0], [1], [0, 0, 1, 1], [], []>} : vector<8x32xf32>, vector<32x32xf32>, vector<8x32xf32> -> vector<8x32xf32>
    %c0_12 = arith.constant 0 : index
    %c0_13 = arith.constant 0 : index
    %10 = vector.load %arg8[%c0_12, %c0_13] : memref<1x32xf32, #tpu.memory_space<vmem>>, vector<1x32xf32>
    %11 = vector.broadcast %10 : vector<1x32xf32> to vector<8x32xf32>
    %12 = arith.addf %9, %11 : vector<8x32xf32>
    %c0_14 = arith.constant 0 : index
    %c0_15 = arith.constant 0 : index
    %c0_16 = arith.constant 0 : index
    %13 = vector.load %arg5[%c0_14, %c0_15, %c0_16] : memref<1x32x32xf32, #tpu.memory_space<vmem>>, vector<1x32x32xf32>
    %14 = vector.shape_cast %13 : vector<1x32x32xf32> to vector<32x32xf32>
    %cst_17 = arith.constant dense<0.000000e+00> : vector<8x32xf32>
    %15 = tpu.matmul %12, %14, %cst_17 {dimension_numbers = #tpu.dot_dimension_numbers<[1], [0], [0], [1], [0, 0, 1, 1], [], []>} : vector<8x32xf32>, vector<32x32xf32>, vector<8x32xf32> -> vector<8x32xf32>
    %16 = vector.shape_cast %15 : vector<8x32xf32> to vector<8x4x8xf32>
    %c0_18 = arith.constant 0 : index
    %c0_19 = arith.constant 0 : index
    %17 = vector.load %arg9[%c0_18, %c0_19] : memref<32x128xf32, #tpu.memory_space<vmem>>, vector<32x128xf32>
    %cst_20 = arith.constant dense<0.000000e+00> : vector<8x128xf32>
    %18 = tpu.matmul %12, %17, %cst_20 {dimension_numbers = #tpu.dot_dimension_numbers<[1], [0], [0], [1], [0, 0, 1, 1], [], []>} : vector<8x32xf32>, vector<32x128xf32>, vector<8x128xf32> -> vector<8x128xf32>
    %19 = vector.shape_cast %18 : vector<8x128xf32> to vector<8x4x32xf32>
    %20 = arith.truncf %19 : vector<8x4x32xf32> to vector<8x4x32xbf16>
    "tpu.trace_start"() <{level = 10 : i32, message = "ihc,ijc->ihj"}> : () -> ()
    %cst_21 = arith.constant dense<0.000000e+00> : vector<8x4x8xf32>
    %21 = tpu.matmul %20, %7, %cst_21 {dimension_numbers = #tpu.dot_dimension_numbers<[2], [2], [1], [1], [0, 0, 0, 1, 1, 1], [0], [0]>} : vector<8x4x32xbf16>, vector<8x8x32xbf16>, vector<8x4x8xf32> -> vector<8x4x8xf32>
    "tpu.trace_stop"() : () -> ()
    %22 = arith.addf %16, %21 : vector<8x4x8xf32>
    %cst_22 = arith.constant 0.353553385 : f32
    %23 = vector.broadcast %cst_22 : f32 to vector<8x4x8xf32>
    %24 = arith.mulf %22, %23 : vector<8x4x8xf32>
    %25 = vector.shape_cast %5 : vector<8x8xi1> to vector<8x1x8xi1>
    %cst_23 = arith.constant -1.000000e+06 : f32
    %26 = vector.shape_cast %25 : vector<8x1x8xi1> to vector<8x1x8xi1>
    %27 = vector.broadcast %26 : vector<8x1x8xi1> to vector<8x4x8xi1>
    %28 = vector.broadcast %cst_23 : f32 to vector<8x4x8xf32>
    %29 = arith.select %27, %28, %24 : vector<8x4x8xi1>, vector<8x4x8xf32>
    %cst_24 = arith.constant dense<0xFF800000> : vector<8x4xf32>
    %30 = vector.multi_reduction <maximumf>, %29, %cst_24 [2] : vector<8x4x8xf32> to vector<8x4xf32>
    %31 = vector.shape_cast %30 : vector<8x4xf32> to vector<8x4x1xf32>
    %32 = vector.broadcast %31 : vector<8x4x1xf32> to vector<8x4x8xf32>
    %33 = arith.subf %29, %32 : vector<8x4x8xf32>
    %34 = math.exp %33 : vector<8x4x8xf32>
    %cst_25 = arith.constant dense<0.000000e+00> : vector<8x4xf32>
    %35 = vector.multi_reduction <add>, %34, %cst_25 [2] : vector<8x4x8xf32> to vector<8x4xf32>
    %36 = vector.shape_cast %35 : vector<8x4xf32> to vector<8x4x1xf32>
    %37 = tpu.reciprocal %36 {approx = true} : vector<8x4x1xf32> -> vector<8x4x1xf32>
    %38 = arith.mulf %36, %37 : vector<8x4x1xf32>
    %cst_26 = arith.constant 2.000000e+00 : f32
    %39 = vector.broadcast %cst_26 : f32 to vector<8x4x1xf32>
    %40 = arith.subf %39, %38 : vector<8x4x1xf32>
    %41 = arith.mulf %37, %40 : vector<8x4x1xf32>
    %42 = vector.broadcast %41 : vector<8x4x1xf32> to vector<8x4x8xf32>
    %43 = arith.mulf %34, %42 : vector<8x4x8xf32>
    %44 = vector.shape_cast %43 : vector<8x4x8xf32> to vector<8x32xf32>
    %c0_27 = arith.constant 0 : index
    %c0_28 = arith.constant 0 : index
    %c0_29 = arith.constant 0 : index
    %45 = vector.load %arg6[%c0_27, %c0_28, %c0_29] : memref<1x32x32xf32, #tpu.memory_space<vmem>>, vector<1x32x32xf32>
    %46 = vector.shape_cast %45 : vector<1x32x32xf32> to vector<32x32xf32>
    %cst_30 = arith.constant dense<0.000000e+00> : vector<8x32xf32>
    %47 = tpu.matmul %44, %46, %cst_30 {dimension_numbers = #tpu.dot_dimension_numbers<[1], [0], [0], [1], [0, 0, 1, 1], [], []>} : vector<8x32xf32>, vector<32x32xf32>, vector<8x32xf32> -> vector<8x32xf32>
    %48 = arith.truncf %43 : vector<8x4x8xf32> to vector<8x4x8xbf16>
    "tpu.trace_start"() <{level = 10 : i32, message = "ihj,ijc->ihc"}> : () -> ()
    %cst_31 = arith.constant dense<0.000000e+00> : vector<8x4x32xf32>
    %49 = tpu.matmul %48, %7, %cst_31 {dimension_numbers = #tpu.dot_dimension_numbers<[2], [1], [1], [2], [0, 0, 0, 1, 1, 2], [0], [0]>} : vector<8x4x8xbf16>, vector<8x8x32xbf16>, vector<8x4x32xf32> -> vector<8x4x32xf32>
    "tpu.trace_stop"() : () -> ()
    %50 = vector.shape_cast %49 : vector<8x4x32xf32> to vector<8x128xf32>
    %c0_32 = arith.constant 0 : index
    %c0_33 = arith.constant 0 : index
    %51 = vector.load %arg10[%c0_32, %c0_33] : memref<128x32xf32, #tpu.memory_space<vmem>>, vector<128x32xf32>
    %cst_34 = arith.constant dense<0.000000e+00> : vector<8x32xf32>
    %52 = tpu.matmul %50, %51, %cst_34 {dimension_numbers = #tpu.dot_dimension_numbers<[1], [0], [0], [1], [0, 0, 1, 1], [], []>} : vector<8x128xf32>, vector<128x32xf32>, vector<8x32xf32> -> vector<8x32xf32>
    %53 = arith.addf %47, %52 : vector<8x32xf32>
    %54 = arith.addf %1, %53 : vector<8x32xf32>
    %c0_35 = arith.constant 0 : index
    %c0_36 = arith.constant 0 : index
    %55 = vector.load %arg12[%c0_35, %c0_36] : memref<1x32xf32, #tpu.memory_space<vmem>>, vector<1x32xf32>
    %c0_37 = arith.constant 0 : index
    %c0_38 = arith.constant 0 : index
    %56 = vector.load %arg13[%c0_37, %c0_38] : memref<1x32xf32, #tpu.memory_space<vmem>>, vector<1x32xf32>
    %cst_39 = arith.constant dense<0.000000e+00> : vector<8xf32>
    %57 = vector.multi_reduction <add>, %54, %cst_39 [1] : vector<8x32xf32> to vector<8xf32>
    %58 = vector.shape_cast %57 : vector<8xf32> to vector<8x1xf32>
    %cst_40 = arith.constant 3.200000e+01 : f32
    %59 = vector.broadcast %cst_40 : f32 to vector<8x1xf32>
    %60 = arith.divf %58, %59 : vector<8x1xf32>
    %61 = vector.broadcast %60 : vector<8x1xf32> to vector<8x32xf32>
    %62 = arith.subf %54, %61 : vector<8x32xf32>
    %63 = arith.mulf %62, %62 : vector<8x32xf32>
    %cst_41 = arith.constant dense<0.000000e+00> : vector<8xf32>
    %64 = vector.multi_reduction <add>, %63, %cst_41 [1] : vector<8x32xf32> to vector<8xf32>
    %65 = vector.shape_cast %64 : vector<8xf32> to vector<8x1xf32>
    %cst_42 = arith.constant 3.200000e+01 : f32
    %66 = vector.broadcast %cst_42 : f32 to vector<8x1xf32>
    %67 = arith.divf %65, %66 : vector<8x1xf32>
    %68 = vector.broadcast %60 : vector<8x1xf32> to vector<8x32xf32>
    %69 = arith.subf %54, %68 : vector<8x32xf32>
    %cst_43 = arith.constant 9.99999974E-6 : f32
    %70 = vector.broadcast %cst_43 : f32 to vector<8x1xf32>
    %71 = arith.addf %67, %70 : vector<8x1xf32>
    %72 = math.rsqrt %71 : vector<8x1xf32>
    %73 = vector.broadcast %72 : vector<8x1xf32> to vector<8x32xf32>
    %74 = arith.mulf %69, %73 : vector<8x32xf32>
    %75 = vector.broadcast %55 : vector<1x32xf32> to vector<8x32xf32>
    %76 = arith.mulf %74, %75 : vector<8x32xf32>
    %77 = vector.broadcast %56 : vector<1x32xf32> to vector<8x32xf32>
    %78 = arith.addf %76, %77 : vector<8x32xf32>
    %c0_44 = arith.constant 0 : index
    %c0_45 = arith.constant 0 : index
    %79 = vector.load %arg11[%c0_44, %c0_45] : memref<32x32xf32, #tpu.memory_space<vmem>>, vector<32x32xf32>
    %cst_46 = arith.constant dense<0.000000e+00> : vector<8x32xf32>
    %80 = tpu.matmul %78, %79, %cst_46 {dimension_numbers = #tpu.dot_dimension_numbers<[1], [0], [0], [1], [0, 0, 1, 1], [], []>} : vector<8x32xf32>, vector<32x32xf32>, vector<8x32xf32> -> vector<8x32xf32>
    %81 = arith.addf %78, %80 : vector<8x32xf32>
    %c0_47 = arith.constant 0 : index
    %c0_48 = arith.constant 0 : index
    %82 = vector.load %arg14[%c0_47, %c0_48] : memref<1x32xf32, #tpu.memory_space<vmem>>, vector<1x32xf32>
    %c0_49 = arith.constant 0 : index
    %c0_50 = arith.constant 0 : index
    %83 = vector.load %arg15[%c0_49, %c0_50] : memref<1x32xf32, #tpu.memory_space<vmem>>, vector<1x32xf32>
    %cst_51 = arith.constant dense<0.000000e+00> : vector<8xf32>
    %84 = vector.multi_reduction <add>, %81, %cst_51 [1] : vector<8x32xf32> to vector<8xf32>
    %85 = vector.shape_cast %84 : vector<8xf32> to vector<8x1xf32>
    %cst_52 = arith.constant 3.200000e+01 : f32
    %86 = vector.broadcast %cst_52 : f32 to vector<8x1xf32>
    %87 = arith.divf %85, %86 : vector<8x1xf32>
    %88 = vector.broadcast %87 : vector<8x1xf32> to vector<8x32xf32>
    %89 = arith.subf %81, %88 : vector<8x32xf32>
    %90 = arith.mulf %89, %89 : vector<8x32xf32>
    %cst_53 = arith.constant dense<0.000000e+00> : vector<8xf32>
    %91 = vector.multi_reduction <add>, %90, %cst_53 [1] : vector<8x32xf32> to vector<8xf32>
    %92 = vector.shape_cast %91 : vector<8xf32> to vector<8x1xf32>
    %cst_54 = arith.constant 3.200000e+01 : f32
    %93 = vector.broadcast %cst_54 : f32 to vector<8x1xf32>
    %94 = arith.divf %92, %93 : vector<8x1xf32>
    %95 = vector.broadcast %87 : vector<8x1xf32> to vector<8x32xf32>
    %96 = arith.subf %81, %95 : vector<8x32xf32>
    %cst_55 = arith.constant 9.99999974E-6 : f32
    %97 = vector.broadcast %cst_55 : f32 to vector<8x1xf32>
    %98 = arith.addf %94, %97 : vector<8x1xf32>
    %99 = math.rsqrt %98 : vector<8x1xf32>
    %100 = vector.broadcast %99 : vector<8x1xf32> to vector<8x32xf32>
    %101 = arith.mulf %96, %100 : vector<8x32xf32>
    %102 = vector.broadcast %82 : vector<1x32xf32> to vector<8x32xf32>
    %103 = arith.mulf %101, %102 : vector<8x32xf32>
    %104 = vector.broadcast %83 : vector<1x32xf32> to vector<8x32xf32>
    %105 = arith.addf %103, %104 : vector<8x32xf32>
    %c0_56 = arith.constant 0 : index
    %c0_57 = arith.constant 0 : index
    %c0_58 = arith.constant 0 : index
    %106 = vector.load %arg16[%c0_56, %c0_57, %c0_58] : memref<1x8x32xf32, #tpu.memory_space<vmem>>, vector<1x8x32xf32>
    %107 = vector.shape_cast %106 : vector<1x8x32xf32> to vector<8x32xf32>
    %108 = vector.shape_cast %105 : vector<8x32xf32> to vector<1x8x32xf32>
    tpu.vector_store %arg16[%c0_56, %c0_57, %c0_58], %108 {strides = array<i32>} : memref<1x8x32xf32, #tpu.memory_space<vmem>>, vector<1x8x32xf32>,
    return
  }
  func.func @transform_0(%arg0: i32, %arg1: i32) -> (i32, i32, i32) {
    %c0_i32 = arith.constant 0 : i32
    %c0_i32_0 = arith.constant 0 : i32
    return %arg0, %arg1, %c0_i32 : i32, i32, i32
  }
  func.func @transform_1(%arg0: i32, %arg1: i32) -> (i32, i32, i32, i32) {
    %c0_i32 = arith.constant 0 : i32
    %c0_i32_0 = arith.constant 0 : i32
    %c0_i32_1 = arith.constant 0 : i32
    return %arg0, %arg1, %c0_i32, %c0_i32_0 : i32, i32, i32, i32
  }
  func.func @transform_2(%arg0: i32, %arg1: i32) -> (i32, i32, i32) {
    %c0_i32 = arith.constant 0 : i32
    %c0_i32_0 = arith.constant 0 : i32
    return %arg0, %arg1, %c0_i32 : i32, i32, i32
  }
  func.func @transform_3(%arg0: i32, %arg1: i32) -> (i32, i32, i32) {
    %c0_i32 = arith.constant 0 : i32
    %c0_i32_0 = arith.constant 0 : i32
    %c0_i32_1 = arith.constant 0 : i32
    return %arg0, %c0_i32, %c0_i32_0 : i32, i32, i32
  }
  func.func @transform_4(%arg0: i32, %arg1: i32) -> (i32, i32, i32) {
    %c0_i32 = arith.constant 0 : i32
    %c0_i32_0 = arith.constant 0 : i32
    %c0_i32_1 = arith.constant 0 : i32
    return %arg0, %c0_i32, %c0_i32_0 : i32, i32, i32
  }
  func.func @transform_5(%arg0: i32, %arg1: i32) -> (i32, i32) {
    %c0_i32 = arith.constant 0 : i32
    %c0_i32_0 = arith.constant 0 : i32
    %c0_i32_1 = arith.constant 0 : i32
    return %c0_i32, %c0_i32_0 : i32, i32
  }
  func.func @transform_6(%arg0: i32, %arg1: i32) -> (i32, i32) {
    %c0_i32 = arith.constant 0 : i32
    %c0_i32_0 = arith.constant 0 : i32
    %c0_i32_1 = arith.constant 0 : i32
    return %c0_i32, %c0_i32_0 : i32, i32
  }
  func.func @transform_7(%arg0: i32, %arg1: i32) -> (i32, i32) {
    %c0_i32 = arith.constant 0 : i32
    %c0_i32_0 = arith.constant 0 : i32
    %c0_i32_1 = arith.constant 0 : i32
    return %c0_i32, %c0_i32_0 : i32, i32
  }
  func.func @transform_8(%arg0: i32, %arg1: i32) -> (i32, i32) {
    %c0_i32 = arith.constant 0 : i32
    %c0_i32_0 = arith.constant 0 : i32
    %c0_i32_1 = arith.constant 0 : i32
    return %c0_i32, %c0_i32_0 : i32, i32
  }
  func.func @transform_9(%arg0: i32, %arg1: i32) -> (i32, i32) {
    %c0_i32 = arith.constant 0 : i32
    %c0_i32_0 = arith.constant 0 : i32
    %c0_i32_1 = arith.constant 0 : i32
    return %c0_i32, %c0_i32_0 : i32, i32
  }
  func.func @transform_10(%arg0: i32, %arg1: i32) -> (i32, i32) {
    %c0_i32 = arith.constant 0 : i32
    %c0_i32_0 = arith.constant 0 : i32
    %c0_i32_1 = arith.constant 0 : i32
    return %c0_i32, %c0_i32_0 : i32, i32
  }
  func.func @transform_11(%arg0: i32, %arg1: i32) -> (i32, i32) {
    %c0_i32 = arith.constant 0 : i32
    %c0_i32_0 = arith.constant 0 : i32
    %c0_i32_1 = arith.constant 0 : i32
    return %c0_i32, %c0_i32_0 : i32, i32
  }
  func.func @transform_12(%arg0: i32, %arg1: i32) -> (i32, i32) {
    %c0_i32 = arith.constant 0 : i32
    %c0_i32_0 = arith.constant 0 : i32
    %c0_i32_1 = arith.constant 0 : i32
    return %c0_i32, %c0_i32_0 : i32, i32
  }
  func.func @transform_13(%arg0: i32, %arg1: i32) -> (i32, i32) {
    %c0_i32 = arith.constant 0 : i32
    %c0_i32_0 = arith.constant 0 : i32
    %c0_i32_1 = arith.constant 0 : i32
    return %c0_i32, %c0_i32_0 : i32, i32
  }
  func.func @transform_14(%arg0: i32, %arg1: i32) -> (i32, i32, i32) {
    %c0_i32 = arith.constant 0 : i32
    %c0_i32_0 = arith.constant 0 : i32
    return %arg0, %arg1, %c0_i32 : i32, i32, i32
  }
}

</mosaic_0001>

<bundles_post_ra>
// kernel: tpu_custom_call.1
= control target key start
LH: loop header
LB: loop body
LE: loop exit
PB: predicated region body
PF: predicated region fallthrough
CT: control target
= control target key end

     0   :  { %s2968_s0 = inlined_call_operand.hbm [shape: f32[2,8,32], index: 0, kind: input, shape index: {}]   ;;  %s2969_s1 = inlined_call_operand.vmem [shape: bf16[2,8,8,32], index: 1, kind: input, shape index: {}]   ;;  %s2970_s2 = inlined_call_operand.hbm [shape: f32[2,8,8], index: 2, kind: input, shape index: {}]   ;;  %s2971_s3 = inlined_call_operand.vmem [shape: f32[2,32,32], index: 3, kind: input, shape index: {}]   ;;  %s2972_s4 = inlined_call_operand.hbm [shape: f32[2,32,32], index: 4, kind: input, shape index: {}]   ;;  %s2973_s5 = inlined_call_operand.vmem [shape: f32[32,32], index: 5, kind: input, shape index: {}]   ;;  %s2974_s6 = inlined_call_operand.vmem [shape: f32[1,32], index: 6, kind: input, shape index: {}]   ;;  %s2975_s7 = inlined_call_operand.hbm [shape: f32[32,128], index: 7, kind: input, shape index: {}]   ;;  %s2976_s8 = inlined_call_operand.vmem [shape: f32[128,32], index: 8, kind: input, shape index: {}]   ;;  %s2977_s9 = inlined_call_operand.hbm [shape: f32[32,32], index: 9, kind: input, shape index: {}]   ;;  %s2978_s10 = inlined_call_operand.vmem [shape: f32[1,32], index: 10, kind: input, shape index: {}]   ;;  %s2979_s11 = inlined_call_operand.vmem [shape: f32[1,32], index: 11, kind: input, shape index: {}]   ;;  %s2980_s12 = inlined_call_operand.vmem [shape: f32[1,32], index: 12, kind: input, shape index: {}]   ;;  %s2981_s13 = inlined_call_operand.vmem [shape: f32[1,32], index: 13, kind: input, shape index: {}]   ;;  %s2982_s14 = inlined_call_operand.hbm [shape: f32[2,8,32], index: 14, kind: output, shape index: {}]  }
   0x1   :  { %2998 = sst [smem:[#allocation23_spill]] %s2969_s1 }
   0x2   :  { %2999 = sst [smem:[#allocation24_spill]] %s2970_s2 }
   0x3   :  { %3000 = sst [smem:[#allocation25_spill]] %s2973_s5 }
   0x4   :  { %3001 = sst [smem:[#allocation26_spill]] %s2974_s6 }
   0x5   :  { %3002 = sst [smem:[#allocation27_spill]] %s2975_s7 }
   0x6   :  { %3003 = sst [smem:[#allocation28_spill]] %s2976_s8 }
   0x7   :  { %3004 = sst [smem:[#allocation29_spill]] %s2977_s9 }
   0x8   :  { %3005 = sst [smem:[#allocation30_spill]] %s2978_s10 }
   0x9   :  { %3006 = sst [smem:[#allocation31_spill]] %s2979_s11 }
   0xa   :  { %3007 = sst [smem:[#allocation32_spill]] %s2980_s12 }
   0xb   :  { %3008 = sst [smem:[#allocation33_spill]] %s2981_s13 }
   0xc   :  { %3009 = sst [smem:[#allocation34_spill]] %s2982_s14 }
   0xd   :  { %19 = vsyncpa [#allocation3], 0 }
   0xe   :  { %21 = vsyncpa [#allocation3 + $0x1], 0 }
   0xf   :  { %22 = vsyncpa [#allocation6], 0 }
  0x10   :  { %24 = vsyncpa [#allocation6 + $0x1], 0 }
  0x11   :  { %25 = vsyncpa [#allocation9], 0 }
  0x12   :  { %26 = vsyncpa [#allocation4], 0 }
  0x13   :  { %28 = vsyncpa [#allocation4 + $0x1], 0  ;;  %s2427_s29 = smov 0   ;;  %s2429_s30 = smov 0  }
  0x14   :  { %s2431_s15 = smov 0   ;;  %s2433_s16 = smov 0  }
  0x15   :  { %s2435_s17 = smov 0   ;;  %s2437_s18 = smov 0  }
  0x16 LB: > { %3010 = sst [smem:[#allocation16_spill]] %s2313_s29  ;;  %s2458_s19 = sadd.s32 4294967295, %s2333_s18   ;;  %s2333_s18 = sphi %s2437_s18, %s34_s18   ;;  %s2329_s17 = sphi %s2435_s17, %s3049_s17   ;;  %s2325_s16 = sphi %s2433_s16, %s3048_s16   ;;  %s2321_s15 = sphi %s2431_s15, %s3044_s15   ;;  %s2317_s30 = sphi %s2429_s30, %s3047_s30   ;;  %s2313_s29 = sphi %s2427_s29, %s3046_s29  }
  0x17   : > { %3011 = sst [smem:[#allocation17_spill]] %s2321_s15  ;;  %p1891_p0 = scmp.ge.s32.totalorder %s2333_s18, 1 }
  0x18   : > { %3012 = sst [smem:[#allocation18_spill]] %s2333_s18  ;;  %p69_p1 = scmp.eq.s32.totalorder %s2458_s19, 0 }
  0x19   : > { %p404_p2 = scmp.lt.s32.totalorder %s2333_s18, 3  ;;  %s3013_s7 = sld [smem:[#allocation27_spill]] }
  0x1a   : > { %s2335_s24 = smov [#allocation8]   ;;  %s2983_s27 = smov 128  }
  0x1b   : > { %p2466_p3 = pnand %p1891_p0, %p404_p2  ;;  %s423_s25 = sshll.u32 %s2335_s24, 4  ;;  %s424_s25 = int_to_ptr.vmem [resolvable:$true] %s423_s25 }
  0x1c   : > { %s2985_s28 = smov 8   ;;  %s1890_s20 = sadd.s32 4294967294, %s2333_s18  }
  0x1d   : > { %p1957_p4 = pneg %p2466_p3  ;;  %s46_s21 = sadd.s32 1, %s2329_s17 }
  0x1e   : > { %s55_s24 = sadd.s32 1, %s2321_s15  ;;  %p48_p7 = scmp.ge.s32.totalorder %s46_s21, 2 }
  0x1f   : > { %s421_s22 = sshll.u32 %s3013_s7, 4  ;;  %p2474_p5 = pnand %p1957_p4, %p69_p1  ;;  %s422_s22 = int_to_ptr.hbm [resolvable:$true] %s421_s22 }
  0x20   : > { %p62_p8 = scmp.ne.s32.totalorder %s2321_s15, %s2317_s30  ;;  %p63_p9 = scmp.eq.s32.totalorder %s2333_s18, 0 }
  0x21   : > { %1960 = dma.hbm_to_vmem [thread:$0]  (!%p2474_p5), %s422_s22, 512, %s424_s25, [#allocation9], %s2983_s27, %s2983_s27, %s2985_s28  }
  0x22   : > { %p68_p10 = scmp.ne.s32.totalorder %s2317_s30, %s2313_s29  ;;  %s3051_s21 = smov (%p48_p7, %s46_s21), 0 }
  0x23   : > { %3016 = sst [smem:[#allocation19_spill]] %s3051_s21  ;;  %p2494_p11 = por %p63_p9, %p62_p8 }
  0x24   : > { %p2500_p12 = por %p69_p1, %p68_p10  ;;  %s50_s25 = ssub.s32 %s2329_s17, %s3051_s21 }
  0x25   : > { %p391_p13 = scmp.eq.s32.totalorder %s2458_s19, 1  ;;  %p53_p0 = scmp.eq.s32.totalorder %s50_s25, 0 }
  0x26   : > { %p397_p2 = scmp.eq.s32.totalorder %s1890_s20, 1  ;;  %p1980_p7 = scmp.lt.s32.totalorder %s2333_s18, 2 }
  0x27   : > { %p2507_p4 = por %p391_p13, %p62_p8  ;;  %s2520_s13 = sand.u32 1, %s2321_s15  }
  0x28   : > { %s2513_s28 = scalar_select %p53_p0, %s2321_s15, %s55_s24  }
  0x29   : > { %s3019_s27 = scalar_select %p2507_p4, 1, 0 }
  0x2a   : > { %3021 = sst [smem:[#allocation21_spill]] %s2513_s28  ;;  %p2515_p9 = por %p397_p2, %p68_p10 }
  0x2b   : > { %3020 = sst [smem:[#allocation20_spill]] %s3019_s27  ;;  %s1895_s14 = sshll.u32 %s2520_s13, 3 }
  0x2c   : > { %s3022_s29 = scalar_select %p2515_p9, 1, 0 }
  0x2d   : > { %s1896_s21 = sshll.u32 %s2329_s17, 3  ;;  %p2526_p6 = pnand %p1980_p7, %p2494_p11 }
  0x2e   : > { %3023 = sst [smem:[#allocation22_spill]] %s3022_s29  ;;  %s499_s25 = sand.u32 1, %s2333_s18  }
  0x2f   : > { %s3025_s2 = sld [smem:[#allocation24_spill]]  ;;  %s503_s29 = scalar_lea.vmem [#allocation5], %s1895_s14 }
  0x30   : > { %s512_s15 = sshll.u32 %s503_s29, 4  ;;  %s500_s11 = scalar_lea.sflag [#allocation6], %s499_s25  ;;  %s513_s15 = int_to_ptr.vmem [resolvable:$true] %s512_s15 }
  0x31   : > { %s1899_s7 = sshll.u32 %s2520_s13, 5  ;;  %s3026_s9 = sld [smem:[#allocation29_spill]] }
  0x32   : > { %s531_s27 = scalar_lea.vmem [#allocation7], %s1899_s7  ;;  %s3027_s29 = smov 8  }
  0x33   : > { %s539_s24 = sshll.u32 %s531_s27, 4  ;;  %s3028_s25 = smov 128   ;;  %s540_s24 = int_to_ptr.vmem [resolvable:$true] %s539_s24 }
  0x34   : > { %s475_s1 = scalar_lea.hbm %s2968_s0, %s1896_s21  ;;  %s470_s10 = scalar_lea.vmem [#allocation2], %s1895_s14 }
  0x35   : > { %s508_s28 = scalar_lea.hbm %s3025_s2, %s1896_s21  ;;  %s2338_s2 = smov [#allocation10]  }
  0x36   : > { %s510_s12 = sshll.u32 %s508_s28, 4  ;;  %s440_s28 = sshll.u32 %s2338_s2, 4  ;;  %s511_s12 = int_to_ptr.hbm [resolvable:$true] %s510_s12  ;;  %s441_s28 = int_to_ptr.vmem [resolvable:$true] %s440_s28 }
  0x37   : > { %1970 = dma.hbm_to_vmem [thread:$0]  (!%p2526_p6), %s511_s12, 128, %s513_s15, %s500_s11  }
  0x38   : > { %s438_s18 = sshll.u32 %s3026_s9, 4  ;;  %s477_s8 = sshll.u32 %s475_s1, 4  ;;  %s439_s18 = int_to_ptr.hbm [resolvable:$true] %s438_s18  ;;  %s478_s8 = int_to_ptr.hbm [resolvable:$true] %s477_s8 }
  0x39   : > { %1963 = dma.hbm_to_vmem [thread:$0]  (!%p2474_p5), %s439_s18, 512, %s441_s28, [#allocation9], %s3028_s25, %s3028_s25, %s3027_s29  }
  0x3a   : > { %s479_s9 = sshll.u32 %s470_s10, 4  ;;  %s467_s7 = scalar_lea.sflag [#allocation3], %s2520_s13  ;;  %s480_s9 = int_to_ptr.vmem [resolvable:$true] %s479_s9 }
  0x3b   : > { %1967 = dma.hbm_to_vmem [thread:$0]  (!%p2526_p6), %s478_s8, 128, %s480_s9, %s467_s7  }
  0x3c   : > { %s1938_s2 = sshll.u32 %s2329_s17, 5  ;;  %551 = sbr.rel (%p2466_p3) target bundleno = 1962 (0x7aa), region = 76 }
  0x3d   : > { %s536_s6 = scalar_lea.hbm %s2972_s4, %s1938_s2  ;;  %s2563_s1 = sand.u32 (!%p2466_p3), 1, %s2317_s30  }
  0x3e   : > { %s537_s5 = sshll.u32 %s536_s6, 4  ;;  %s2566_s9 = sshll.u32 (!%p2466_p3), %s2563_s1, 3  ;;  %s538_s5 = int_to_ptr.hbm [resolvable:$true] %s537_s5 }
  0x3f   : > { %1973 = dma.hbm_to_vmem [thread:$0]  (!%p2526_p6), %s538_s5, 512, %s540_s24, %s500_s11, %s3028_s25, %s3028_s25, %s3027_s29  }
  0x40   : > { %s554_s13 = scalar_lea.sflag (!%p2466_p3), [#allocation3], %s2563_s1  ;;  %s557_s6 = scalar_lea.vmem (!%p2466_p3), [#allocation2], %s2566_s9 }
  0x41   : > { %2296 = dma.done.wait (%p2500_p12), %s554_s13, 128  }
  0x42   : > { %2298 = vsyncadd (%p2500_p12), %s554_s13, 4294967168  ;;  %s563_s5 = sand.u32 1, %s2458_s19   ;;  %s567_s14 = scalar_lea.vmem [#allocation5], %s2566_s9 }
  0x43   : > { %s564_s11 = scalar_lea.sflag [#allocation6], %s563_s5 }
  0x44   : > { %2300 = dma.done.wait (%p2500_p12), %s564_s11, 640  }
  0x45   : > { %2302 = vsyncadd (%p2500_p12), %s564_s11, 4294966656  ;;  %s1905_s18 = sshll.u32 %s2563_s1, 5 }
  0x46   : > { %s2581_s23 = scalar_lea.vmem [#allocation7], %s1905_s18 }
  0x47   : > { %2304 = dma.done.wait (%p69_p1), [#allocation9], 1024  }
  0x48   : > { %2306 = vsyncadd (%p69_p1), [#allocation9], 4294966272  ;;  %p658_p3 = scmp.lt.s32.totalorder %s2325_s16, 1  ;;  %s3029_s12 = sld [smem:[#allocation25_spill]]  ;;  %v813_v4 = vld [vmem:[#allocation8 + $0x18] sm:$0xff]  ;;  %v812_v6 = vld [vmem:[#allocation8 + $0x10] sm:$0xff] }
  0x49   : > { %826 = vmatpush.msra.mxu2 %v813_v4  ;;  %v673_v8 = vld [vmem:[%s557_s6] sm:$0xff]  ;;  %vm692_vm0 = vcmask 261120   ;;  %s3030_s13 = sld [smem:[#allocation26_spill]]  ;;  %s2339_s5 = smov 104   ;;  %v2345_v36 = vmov 1983009808  }
  0x4a   : > { %s2589_s21 = scalar_select %p658_p3, %s2325_s16, 1  ;;  %v811_v10 = vld [vmem:[#allocation8 + $0x8] sm:$0xff]  ;;  %v810_v12 = vld [vmem:[#allocation8] sm:$0xff]  ;;  %v759_v37 = vunpack.c.l.s4 %v2345_v36  ;;  %vm754_vm1 = vcmask 1047556   ;;  %v2346_v43 = vmov 1934713408  }
  0x4b   : > { %827 = vmatpush.msra.mxu2 %v812_v6  ;;  %s2340_s11 = smov 96   ;;  %s2341_s18 = smov 64   ;;  %v783_v44 = vunpack.c.l.s4 %v2346_v43  ;;  %vm1324_vm2 = vcmask 1043456   ;;  %v2347_v36 = vmov 0   ;;  %vm1122_vm8 = vcmask 60416  }
  0x4c   : > { %s1939_s20 = sshll.u32 %s2589_s21, 5  ;;  %s2342_s22 = smov 120   ;;  %v2651_v39 = vunpack.c.0.s8 %v759_v37 }
  0x4d   : > { %s671_s28 = scalar_lea.vmem %s2971_s3, %s1939_s20  ;;  %828 = vmatpush.msra.mxu2 %v811_v10  ;;  %s2343_s24 = smov 32   ;;  %v2657_v52 = vunpack.c.0.s8 %v783_v44 }
  0x4e   : > { %v687_v0 = vld [vmem:[%s3029_s12 + $0x18] sm:$0xff]  ;;  %v686_v1 = vld [vmem:[%s3029_s12 + $0x10] sm:$0xff]  ;;  %v685_v2 = vld [vmem:[%s3029_s12 + $0x8] sm:$0xff]  ;;  %s3031_s19 = sld [smem:[#allocation23_spill]]  ;;  %s2349_s10 = smov 16  }
  0x4f   : > { %708 = vmatpush.msra.mxu0 %v687_v0  ;;  %v719_v3 = vld [vmem:[%s671_s28 + $0x18] sm:$0xff]  ;;  %v718_v5 = vld [vmem:[%s671_s28 + $0x10] sm:$0xff]  ;;  %v684_v7 = vld [vmem:[%s3029_s12] sm:$0xff]  ;;  %829 = vmatpush.msra.mxu2 %v810_v12  ;;  %s3032_s8 = sld [smem:[#allocation28_spill]]  ;;  %s2350_s7 = smov 24  }
  0x50   : > { %735 = vmatpush.msra.mxu1 %v719_v3  ;;  %v717_v9 = vld [vmem:[%s671_s28 + $0x8] sm:$0xff]  ;;  %v716_v11 = vld [vmem:[%s671_s28] sm:$0xff]  ;;  %s2344_s28 = smov 112   ;;  %s3033_s25 = sld [smem:[#allocation30_spill]] }
  0x51   : > { %709 = vmatpush.msra.mxu0 %v686_v1  ;;  %v2049_v13 = vld [vmem:[%s3030_s13] ss:$0 sm:$0xff]  ;;  %s1935_s21 = sshll.u32 %s2325_s16, 3  ;;  %s3036_s26 = sld [smem:[#allocation34_spill]] }
  0x52   : > { %736 = vmatpush.msra.mxu1 %v718_v5  ;;  %s656_s16 = scalar_lea.vmem [#allocation11], %s2566_s9  ;;  %s1700_s29 = scalar_lea.sflag [#allocation4], %s2563_s1 }
  0x53   : > { %710 = vmatpush.msra.mxu0 %v685_v2 }
  0x54   : > { %737 = vmatpush.msra.mxu1 %v717_v9  ;;  %s665_s15 = scalar_lea.vmem %s3031_s19, %s1939_s20 }
  0x55   : > { %711 = vmatpush.msra.mxu0 %v684_v7  ;;  %v678_v18 = vld [vmem:[%s665_s15 + $0x8] sm:$0xf]  ;;  %v676_v20 = vld [vmem:[%s665_s15] sm:$0xf]  ;;  %v679_v22 = vld [vmem:[%s665_s15 + $0xc] sm:$0xf] }
  0x56   : > { %1913 = vmatmul.msk.f32.vlgmr.msra.gmra.mxu0 %vm692_vm0, %v673_v8  ;;  %738 = vmatpush.msra.mxu1 %v716_v11  ;;  %v950_v19 = vsel %vm692_vm0, %v678_v18, 0  ;;  %v912_v21 = vsel %vm692_vm0, %v676_v20, 0  ;;  %v969_v23 = vsel %vm692_vm0, %v679_v22, 0  ;;  %v677_v24 = vld [vmem:[%s665_s15 + $0x4] sm:$0xf]  ;;  %v1361_v60 = vsel %vm1324_vm2, %v678_v18, 0 }
  0x57   : > { %921 = vmatpush.bf16.xpose.msra.mxu3 %v912_v21  ;;  %978 = vmatpush.bf16.xpose.msrb.mxu2 %v969_v23  ;;  %v931_v25 = vsel %vm692_vm0, %v677_v24, 0  ;;  %v2634_v26 = vld [vmem:[%s665_s15 + $0x10] sm:$0xf]  ;;  %v2636_v27 = vld [vmem:[%s665_s15 + $0x1c] sm:$0xf]  ;;  %v1325_v0 = vsel %vm1324_vm2, %v676_v20, 0  ;;  %s1711_s13 = scalar_lea.hbm %s3036_s26, %s1935_s21 }
  0x58   : > { %959 = vmatpush.bf16.xpose.msrb.mxu1 %v950_v19  ;;  %940 = vmatpush.bf16.xpose.msrb.mxu0 %v931_v25  ;;  %v988_v28 = vsel %vm692_vm0, %v2634_v26, 0  ;;  %v1045_v29 = vsel %vm692_vm0, %v2636_v27, 0  ;;  %v2642_v30 = vld [vmem:[%s665_s15 + $0x18] sm:$0xf]  ;;  %v2644_v31 = vld [vmem:[%s665_s15 + $0x14] sm:$0xf] }
  0x59   : > { %v1026_v32 = vsel %vm692_vm0, %v2642_v30, 0  ;;  %v1007_v33 = vsel %vm692_vm0, %v2644_v31, 0  ;;  %v1379_v6 = vsel %vm1324_vm2, %v679_v22, 0  ;;  %v1343_v10 = vsel %vm1324_vm2, %v677_v24, 0  ;;  %s2263_s9 = scalar_lea.hbm %s3036_s26, 16 }
  0x5a   : > { %v1397_v20 = vsel %vm1324_vm2, %v2634_v26, 0 }
  0x5f   : > { %997 = vmatpush.bf16.xpose.msrb.mxu3 %v988_v28 }
  0x60   : > { %1016 = vmatpush.bf16.xpose.msra.mxu0 %v1007_v33 }
  0xd3   : > { %v713_v14 = vpop.f32.mrf.mxu0 }
  0xd4   : > { %v714_v15 = vadd.f32 %v2049_v13, %v713_v14 }
  0xd6   : > { %1914 = vmatmul.msk.f32.vlgmr.msra.gmra.mxu1 %vm692_vm0, %v714_v15  ;;  %1915 = vmatmul.msk.f32.vlgmr.msra.gmra.mxu2 %vm692_vm0, %v714_v15 }
  0xd7   : > { %1054 = vmatpush.bf16.xpose.msra.mxu2 %v1045_v29  ;;  %1035 = vmatpush.bf16.xpose.msra.mxu1 %v1026_v32  ;;  %v674_v29 = vld [vmem:[%s567_s14] sm:$0xff]  ;;  %s2348_s14 = smov 8  }
  0xd8   : > { %vm675_vm3 = vcmp.eq.f32.partialorder %v674_v29, 0.0 }
  0xd9   : > { %v2694_v37 = vsel %vm675_vm3, 1, %v2347_v36 }
 0x153   : > { %v2617_v16 = vpop.f32.mrf.mxu1 }
 0x154   : > { %750 = vrot.lane.b32.xlu2 %v2617_v16, %s2339_s5 }
 0x159   : > { %v831_v17 = vpop.f32.mrf.mxu2 }
 0x15a   : > { %835 = vrot.lane.b32.xlu1 %v831_v17, %s2340_s11  ;;  %838 = vrot.lane.b32.xlu0 %v831_v17, %s2341_s18  ;;  %v846_v47 = vrot.slane %v831_v17, 4 }
 0x15c   : > { %744 = vrot.lane.b32.xlu2 %v2617_v16, %s2342_s22  ;;  %s3038_s22 = sld [smem:[#allocation33_spill]] }
 0x162   : > { %841 = vrot.lane.b32.xlu0 %v831_v17, %s2343_s24  ;;  %747 = vrot.lane.b32.xlu1 %v2617_v16, %s2344_s28  ;;  %s1715_s28 = sshll.u32 %s1711_s13, 4  ;;  %s1716_s28 = int_to_ptr.hbm [resolvable:$true] %s1715_s28 }
 0x1ae   : > { %v751_v25 = vpop.permute.xlu2 %750 }
 0x1af   : > { %v766_v33 = vrot.slane %v751_v25, 4 }
 0x1b6   : > { %v745_v26 = vpop.permute.xlu2 %744 }
 0x1cc   : > { %v839_v34 = vpop.permute.xlu0 %838  ;;  %v836_v40 = vpop.permute.xlu1 %835 }
 0x1cd   : > { %v844_v35 = vrot.slane %v839_v34, 4  ;;  %v858_v46 = vrot.slane %v836_v40, 4  ;;  %v847_v51 = vsel %vm754_vm1, %v839_v34, %v846_v47  ;;  %v767_v34 = vsel %vm754_vm1, %v766_v33, %v745_v26 }
 0x1ce   : > { %v855_v57 = vperm.slane %v847_v51, %v2651_v39 }
 0x1cf   : > { %v845_v38 = vsel %vm754_vm1, %v844_v35, %v831_v17 }
 0x1d0   : > { %v851_v41 = vperm.slane %v845_v38, %v2651_v39  ;;  %v882_v4 = vrot.slane %v855_v57, 4  ;;  %v773_v38 = vperm.slane %v767_v34, %v2651_v39 }
 0x1d2   : > { %v870_v49 = vrot.slane %v851_v41, 4 }
 0x1d4   : > { %v842_v42 = vpop.permute.xlu0 %841  ;;  %v748_v28 = vpop.permute.xlu1 %747 }
 0x1d5   : > { %v856_v45 = vrot.slane %v842_v42, 4  ;;  %v859_v53 = vsel %vm754_vm1, %v842_v42, %v858_v46  ;;  %v753_v32 = vrot.slane %v748_v28, 4  ;;  %v778_v42 = vrot.slane %v773_v38, 4 }
 0x1d6   : > { %v867_v58 = vperm.slane %v859_v53, %v2651_v39 }
 0x1d7   : > { %v857_v48 = vsel %vm754_vm1, %v856_v45, %v836_v40  ;;  %v755_v35 = vsel %vm754_vm1, %v753_v32, %v2617_v16  ;;  %v1077_v45 = vrot.slane %v2694_v37, 1  ;;  %v1083_v32 = vrot.slane %v2694_v37, 7 }
 0x1d8   : > { %v863_v50 = vperm.slane %v857_v48, %v2651_v39  ;;  %v880_v5 = vrot.slane %v867_v58, 4  ;;  %v883_v9 = vsel %vm754_vm1, %v867_v58, %v882_v4  ;;  %v761_v40 = vperm.slane %v755_v35, %v2651_v39 }
 0x1d9   : > { %v891_v13 = vperm.slane %v883_v9, %v2657_v52  ;;  %vm1084_vm5 = vcmp.ne.s32.totalorder %v1077_v45, 0  ;;  %vm1090_vm14 = vcmp.ne.s32.totalorder %v1083_v32, 0 }
 0x1da   : > { %v868_v54 = vrot.slane %v863_v50, 4  ;;  %v871_v55 = vsel %vm754_vm1, %v863_v50, %v870_v49  ;;  %v881_v12 = vsel %vm754_vm1, %v880_v5, %v855_v57  ;;  %v780_v43 = vrot.slane %v761_v40, 4 }
 0x1db   : > { %v879_v56 = vperm.slane %v871_v55, %v2657_v52  ;;  %v887_v14 = vperm.slane %v881_v12, %v2657_v52  ;;  %v898_v15 = vrot.slane %v891_v13, 4  ;;  %v906_v18 = vpack.c.bf16 %v891_v13, %v891_v13 }
 0x1dc   : > { %v869_v59 = vsel %vm754_vm1, %v868_v54, %v851_v41  ;;  %v1078_v41 = vrot.slane %v2694_v37, 2  ;;  %v779_v44 = vsel %vm754_vm1, %v778_v42, %v761_v40  ;;  %v781_v47 = vsel %vm754_vm1, %v773_v38, %v780_v43 }
 0x1dd   : > { %v902_v61 = vpack.c.bf16 %v879_v56, %v879_v56  ;;  %v875_v62 = vperm.slane %v869_v59, %v2657_v52  ;;  %v894_v63 = vrot.slane %v879_v56, 4  ;;  %v896_v17 = vrot.slane %v887_v14, 4 }
 0x1de   : > { %v899_v19 = vsel %vm754_vm1, 0.0, %v898_v15  ;;  %v904_v21 = vpack.c.bf16 %v887_v14, %v887_v14  ;;  %vm1085_vm4 = vcmp.ne.s32.totalorder %v1078_v41, 0  ;;  %v785_v48 = vperm.slane %v779_v44, %v2657_v52 }
 0x1df   : > { %1918 = vmatmul.msk.bf16.vlgmr.msrb.gmra.mxu1 %vm692_vm0, %v902_v61  ;;  %v892_v1 = vrot.slane %v875_v62, 4  ;;  %v900_v2 = vpack.c.bf16 %v875_v62, %v875_v62  ;;  %v895_v3 = vsel %vm754_vm1, 0.0, %v894_v63  ;;  %v897_v22 = vsel %vm754_vm1, 0.0, %v896_v17 }
 0x1e0   : > { %v903_v7 = vpack.c.bf16 %v895_v3, %v895_v3  ;;  %1370 = vmatpush.bf16.msrb.mxu1 %v1361_v60  ;;  %v907_v23 = vpack.c.bf16 %v899_v19, %v899_v19  ;;  %v905_v24 = vpack.c.bf16 %v897_v22, %v897_v22  ;;  %v1092_v46 = vsel %vm1085_vm4, 1, %v2347_v36 }
 0x1e1   : > { %1916 = vmatmul.msk.bf16.vlgmr.msra.gmra.mxu3 %vm692_vm0, %v900_v2  ;;  %v893_v8 = vsel %vm754_vm1, 0.0, %v892_v1  ;;  %v1079_v49 = vrot.slane %v2694_v37, 3  ;;  %v756_v50 = vrot.slane %v2617_v16, 4  ;;  %v1100_v51 = vperm.slane %v1092_v46, 0 }
 0x1e2   : > { %1919 = vmatmul.msk.bf16.vlgmr.msrb.gmra.mxu2 %vm692_vm0, %v903_v7  ;;  %v901_v11 = vpack.c.bf16 %v893_v8, %v893_v8  ;;  %1334 = vmatpush.bf16.msra.mxu3 %v1325_v0  ;;  %v789_v53 = vperm.slane %v781_v47, %v2657_v52  ;;  %v802_v57 = vrot.slane %v785_v48, 4  ;;  %v1091_v58 = vsel %vm1084_vm5, 1, %v2347_v36 }
 0x1e3   : > { %1388 = vmatpush.bf16.msrb.mxu2 %v1379_v6  ;;  %v757_v54 = vsel %vm754_vm1, %v748_v28, %v756_v50  ;;  %vm1086_vm6 = vcmp.ne.s32.totalorder %v1079_v49, 0  ;;  %v768_v59 = vrot.slane %v745_v26, 4  ;;  %vm1108_vm7 = vcmp.eq.s32.totalorder %v1100_v51, 1 }
 0x1e4   : > { %1917 = vmatmul.msk.bf16.vlgmr.msrb.gmra.mxu0 %vm692_vm0, %v901_v11  ;;  %v765_v61 = vperm.slane %v757_v54, %v2651_v39  ;;  %v1099_v62 = vperm.slane %v1091_v58, 0  ;;  %v1093_v16 = vsel %vm1086_vm6, 1, %v2347_v36  ;;  %v1082_v63 = vrot.slane %v2694_v37, 6 }
 0x1e5   : > { %1352 = vmatpush.bf16.msrb.mxu0 %v1343_v10  ;;  %v803_v0 = vsel %vm754_vm1, 0.0, %v802_v57  ;;  %v804_v3 = vrot.slane %v789_v53, 4  ;;  %v769_v4 = vsel %vm754_vm1, %v751_v25, %v768_v59  ;;  %v1098_v7 = vperm.slane %v2694_v37, 0 }
 0x1e6   : > { %v1101_v8 = vperm.slane %v1093_v16, 0  ;;  %v792_v9 = vrot.slane %v765_v61, 4  ;;  %vm1107_vm9 = vcmp.eq.s32.totalorder %v1099_v62, 1  ;;  %vm1089_vm10 = vcmp.ne.s32.totalorder %v1082_v63, 0 }
 0x1e7   : > { %v777_v13 = vperm.slane %v769_v4, %v2651_v39  ;;  %v805_v15 = vsel %vm754_vm1, 0.0, %v804_v3  ;;  %vm1106_vm11 = vcmp.eq.s32.totalorder %v1098_v7, 1  ;;  %v1081_v49 = vrot.slane %v2694_v37, 5 }
 0x1e8   : > { %vm1109_vm12 = vcmp.eq.s32.totalorder %v1101_v8, 1  ;;  %v1097_v50 = vsel %vm1090_vm14, 1, %v2347_v36 }
 0x1e9   : > { %v790_v25 = vrot.slane %v777_v13, 4  ;;  %v1105_v58 = vperm.slane %v1097_v50, 0  ;;  %vm1088_vm3 = vcmp.ne.s32.totalorder %v1081_v49, 0 }
 0x1ea   : > { %v1095_v63 = vsel %vm1088_vm3, 1, %v2347_v36 }
 0x1eb   : > { %v791_v43 = vsel %vm754_vm1, %v790_v25, %v765_v61  ;;  %vm1113_vm5 = vcmp.eq.s32.totalorder %v1105_v58, 1  ;;  %v1103_v7 = vperm.slane %v1095_v63, 0 }
 0x1ec   : > { %v797_v47 = vperm.slane %v791_v43, %v2657_v52 }
 0x1ed   : > { %vm1111_vm6 = vcmp.eq.s32.totalorder %v1103_v7, 1 }
 0x1ee   : > { %v806_v57 = vrot.slane %v797_v47, 4 }
 0x1ef   : > { %1922 = vmatmul.msk.bf16.vlgmr.msra.gmra.mxu1 %vm692_vm0, %v906_v18 }
 0x1f1   : > { %1920 = vmatmul.msk.bf16.vlgmr.msrb.gmra.mxu3 %vm692_vm0, %v904_v21  ;;  %v1096_v21 = vsel %vm1089_vm10, 1, %v2347_v36 }
 0x1f2   : > { %1923 = vmatmul.msk.bf16.vlgmr.msra.gmra.mxu2 %vm692_vm0, %v907_v23  ;;  %1406 = vmatpush.bf16.msrb.mxu3 %v1397_v20  ;;  %v793_v23 = vsel %vm754_vm1, %v777_v13, %v792_v9  ;;  %v1104_v35 = vperm.slane %v1096_v21, 0 }
 0x1f3   : > { %v801_v40 = vperm.slane %v793_v23, %v2657_v52 }
 0x1f4   : > { %1921 = vmatmul.msk.bf16.vlgmr.msra.gmra.mxu0 %vm692_vm0, %v905_v24  ;;  %v1080_v24 = vrot.slane %v2694_v37, 4  ;;  %vm1112_vm15 = vcmp.eq.s32.totalorder %v1104_v35, 1 }
 0x1f5   : > { %v808_v54 = vrot.slane %v801_v40, 4 }
 0x1f6   : > { %vm1087_vm13 = vcmp.ne.s32.totalorder %v1080_v24, 0 }
 0x1f7   : > { %v809_v62 = vsel %vm754_vm1, 0.0, %v808_v54 }
 0x25c   : > { %v961_v55 = vpop.f32.mrf.mxu1 }
 0x25d   : > { %v1062_v56 = vadd.f32 %v961_v55, %v789_v53 }
 0x25f   : > { %v1070_v60 = vmul.f32 0.35355338, %v1062_v56 }
 0x261   : > { %v942_v1 = vpop.f32.mrf.mxu0  ;;  %v2713_v2 = vsel %vm1108_vm7, -1000000.0, %v1070_v60  ;;  %vm1303_vm7 = vcmask 64512  }
 0x262   : > { %v1061_v5 = vadd.f32 %v942_v1, %v803_v0  ;;  %v1129_v6 = vsel %vm1122_vm8, %v2713_v2, -inf  ;;  %v807_v0 = vsel %vm754_vm1, 0.0, %v806_v57 }
 0x263   : > { %1130 = vmax.xlane.f32.xlu2 %v1129_v6 }
 0x264   : > { %v1069_v10 = vmul.f32 0.35355338, %v1061_v5  ;;  %v923_v11 = vpop.f32.mrf.mxu3  ;;  %v963_v12 = vpop.f32.mrf.mxu1 }
 0x265   : > { %v1060_v14 = vadd.f32 %v923_v11, %v785_v48  ;;  %v980_v17 = vpop.f32.mrf.mxu2  ;;  %v1094_v48 = vsel %vm1087_vm13, 1, %v2347_v36 }
 0x266   : > { %v1063_v18 = vadd.f32 %v980_v17, %v805_v15  ;;  %v2721_v20 = vsel %vm1107_vm9, -1000000.0, %v1069_v10  ;;  %v1102_v56 = vperm.slane %v1094_v48, 0  ;;  %vm1307_vm9 = vcmask 195584  }
 0x267   : > { %v1068_v19 = vmul.f32 0.35355338, %v1060_v14  ;;  %v1126_v33 = vsel %vm1122_vm8, %v2721_v20, -inf }
 0x268   : > { %v1071_v22 = vmul.f32 0.35355338, %v1063_v18  ;;  %vm1110_vm4 = vcmp.eq.s32.totalorder %v1102_v56, 1 }
 0x269   : > { %v944_v28 = vpop.f32.mrf.mxu0  ;;  %v2726_v29 = vsel %vm1106_vm11, -1000000.0, %v1068_v19 }
 0x26a   : > { %v1123_v26 = vsel %vm1122_vm8, %v2726_v29, -inf  ;;  %v2733_v34 = vsel %vm1109_vm12, -1000000.0, %v1071_v22 }
 0x26b   : > { %1124 = vmax.xlane.f32.xlu1 %v1123_v26  ;;  %1127 = vmax.xlane.f32.xlu2 %v1126_v33  ;;  %v1132_v38 = vsel %vm1122_vm8, %v2733_v34, -inf }
 0x26c   : > { %v925_v41 = vpop.f32.mrf.mxu3  ;;  %1133 = vmax.xlane.f32.xlu0 %v1132_v38  ;;  %v1037_v42 = vpop.f32.mrf.mxu1 }
 0x26d   : > { %v1066_v44 = vadd.f32 %v1037_v42, %v801_v40  ;;  %v982_v45 = vpop.f32.mrf.mxu2 }
 0x26f   : > { %v1074_v46 = vmul.f32 0.35355338, %v1066_v44 }
 0x271   : > { %v1018_v51 = vpop.f32.mrf.mxu0  ;;  %v2743_v53 = vsel %vm1112_vm15, -1000000.0, %v1074_v46 }
 0x272   : > { %v1141_v55 = vsel %vm1122_vm8, %v2743_v53, -inf  ;;  %v1065_v3 = vadd.f32 %v1018_v51, %v807_v0 }
 0x273   : > { %1142 = vmax.xlane.f32.xlu2 %v1141_v55 }
 0x274   : > { %v999_v59 = vpop.f32.mrf.mxu3  ;;  %v1039_v60 = vpop.f32.mrf.mxu1  ;;  %v1073_v11 = vmul.f32 0.35355338, %v1065_v3  ;;  %v1451_v3 = vsel %vm1324_vm2, %v2636_v27, 0  ;;  %v1415_v27 = vsel %vm1324_vm2, %v2644_v31, 0 }
 0x275   : > { %v1064_v61 = vadd.f32 %v999_v59, %v797_v47  ;;  %v1056_v37 = vpop.f32.mrf.mxu2  ;;  %1460 = vmatpush.bf16.msra.mxu2 %v1451_v3  ;;  %1424 = vmatpush.bf16.msra.mxu0 %v1415_v27 }
 0x276   : > { %v1067_v16 = vadd.f32 %v1056_v37, %v809_v62  ;;  %v1119_v36 = vsel %vm1111_vm6, -1000000.0, %v1073_v11 }
 0x277   : > { %v1072_v1 = vmul.f32 0.35355338, %v1064_v61  ;;  %v1138_v14 = vsel %vm1122_vm8, %v1119_v36, -inf }
 0x278   : > { %v1075_v4 = vmul.f32 0.35355338, %v1067_v16 }
 0x279   : > { %v1020_v5 = vpop.f32.mrf.mxu0  ;;  %v1118_v6 = vsel %vm1110_vm4, -1000000.0, %v1072_v1 }
 0x27a   : > { %v1135_v8 = vsel %vm1122_vm8, %v1118_v6, -inf  ;;  %v1121_v9 = vsel %vm1113_vm5, -1000000.0, %v1075_v4  ;;  %v1433_v4 = vsel %vm1324_vm2, %v2642_v30, 0  ;;  %vm1537_vm2 = vcmask 785408  }
 0x27b   : > { %1136 = vmax.xlane.f32.xlu1 %v1135_v8  ;;  %v1144_v10 = vsel %vm1122_vm8, %v1121_v9, -inf  ;;  %1442 = vmatpush.bf16.msra.mxu1 %v1433_v4 }
 0x27c   : > { %v1001_v12 = vpop.f32.mrf.mxu3  ;;  %1145 = vmax.xlane.f32.xlu0 %v1144_v10 }
 0x27d   : > { %v1058_v13 = vpop.f32.mrf.mxu2 }
 0x284   : > { %1139 = vmax.xlane.f32.xlu0 %v1138_v14 }
 0x2d6   : > { %v1131_v15 = vpop.xlane.xlu2 %1130 }
 0x2d7   : > { %v1149_v17 = vsub.f32 %v2713_v2, %v1131_v15 }
 0x2d9   : > { %v1159_v18 = vmul.f32 1.442695, %v1149_v17 }
 0x2db   : > { %2054 = vpow2.f32 %v1159_v18 }
 0x2de   : > { %v1125_v19 = vpop.xlane.xlu1 %1124  ;;  %v1128_v21 = vpop.xlane.xlu2 %1127 }
 0x2df   : > { %v1147_v22 = vsub.f32 %v2726_v29, %v1125_v19  ;;  %v1134_v23 = vpop.xlane.xlu0 %1133  ;;  %v1148_v33 = vsub.f32 %v2721_v20, %v1128_v21 }
 0x2e0   : > { %v1150_v24 = vsub.f32 %v2733_v34, %v1134_v23 }
 0x2e1   : > { %v2055_v25 = vpop.eup %2054  ;;  %v1155_v28 = vmul.f32 1.442695, %v1147_v22  ;;  %v1157_v2 = vmul.f32 1.442695, %v1148_v33 }
 0x2e2   : > { %v1161_v32 = vmul.f32 1.442695, %v1150_v24  ;;  %v1177_v26 = vsel %vm1122_vm8, %v2055_v25, 0.0 }
 0x2e3   : > { %2056 = vpow2.f32 %v1155_v28  ;;  %1178 = vadd.xlane.f32.xlu0 %v1177_v26 }
 0x2e4   : > { %2058 = vpow2.f32 %v1161_v32 }
 0x2e5   : > { %2060 = vpow2.f32 %v1157_v2 }
 0x2e6   : > { %v1143_v35 = vpop.xlane.xlu2 %1142 }
 0x2e7   : > { %v1153_v40 = vsub.f32 %v2743_v53, %v1143_v35 }
 0x2e9   : > { %v2758_v38 = vpop.eup %2056  ;;  %v1167_v20 = vmul.f32 1.442695, %v1153_v40 }
 0x2ea   : > { %v1171_v29 = vsel %vm1122_vm8, %v2758_v38, 0.0  ;;  %v2763_v34 = vpop.eup %2058 }
 0x2eb   : > { %1172 = vadd.xlane.f32.xlu2 %v1171_v29  ;;  %v1180_v41 = vsel %vm1122_vm8, %v2763_v34, 0.0  ;;  %v2767_v46 = vpop.eup %2060  ;;  %2062 = vpow2.f32 %v1167_v20 }
 0x2ec   : > { %1181 = vadd.xlane.f32.xlu1 %v1180_v41  ;;  %v1174_v49 = vsel %vm1122_vm8, %v2767_v46, 0.0 }
 0x2ee   : > { %v1137_v42 = vpop.xlane.xlu1 %1136 }
 0x2ef   : > { %v1151_v43 = vsub.f32 %v1118_v6, %v1137_v42  ;;  %v1146_v44 = vpop.xlane.xlu0 %1145 }
 0x2f0   : > { %v1154_v45 = vsub.f32 %v1121_v9, %v1146_v44 }
 0x2f1   : > { %v1163_v47 = vmul.f32 1.442695, %v1151_v43  ;;  %v2771_v51 = vpop.eup %2062 }
 0x2f2   : > { %v1169_v48 = vmul.f32 1.442695, %v1154_v45  ;;  %v1189_v59 = vsel %vm1122_vm8, %v2771_v51, 0.0 }
 0x2f3   : > { %2064 = vpow2.f32 %v1163_v47 }
 0x2f4   : > { %2066 = vpow2.f32 %v1169_v48  ;;  %1175 = vadd.xlane.f32.xlu1 %v1174_v49 }
 0x2f7   : > { %v1140_v50 = vpop.xlane.xlu0 %1139 }
 0x2f8   : > { %v1152_v53 = vsub.f32 %v1119_v36, %v1140_v50 }
 0x2f9   : > { %v2773_v54 = vpop.eup %2064 }
 0x2fa   : > { %v2775_v55 = vpop.eup %2066  ;;  %v1165_v56 = vmul.f32 1.442695, %v1152_v53  ;;  %v1183_v57 = vsel %vm1122_vm8, %v2773_v54, 0.0 }
 0x2fb   : > { %1184 = vadd.xlane.f32.xlu0 %v1183_v57  ;;  %v1192_v58 = vsel %vm1122_vm8, %v2775_v55, 0.0 }
 0x2fc   : > { %2068 = vpow2.f32 %v1165_v56  ;;  %1193 = vadd.xlane.f32.xlu2 %v1192_v58  ;;  %1190 = vadd.xlane.f32.xlu1 %v1189_v59 }
 0x302   : > { %v2783_v60 = vpop.eup %2068 }
 0x303   : > { %v1186_v61 = vsel %vm1122_vm8, %v2783_v60, 0.0  ;;  %vm1305_vm8 = vcmask 130048  }
 0x304   : > { %1187 = vadd.xlane.f32.xlu2 %v1186_v61 }
 0x356   : > { %v1179_v62 = vpop.xlane.xlu0 %1178 }
 0x357   : > { %2070 = vrcp.f32 %v1179_v62 }
 0x35d   : > { %v2071_v37 = vpop.eup %2070 }
 0x35e   : > { %v1205_v16 = vmul.f32 %v2071_v37, %v1179_v62  ;;  %v1173_v63 = vpop.xlane.xlu2 %1172 }
 0x35f   : > { %2072 = vrcp.f32 %v1173_v63  ;;  %v1182_v1 = vpop.xlane.xlu1 %1181 }
 0x360   : > { %v1213_v0 = vsub.f32 2.0, %v1205_v16  ;;  %2074 = vrcp.f32 %v1182_v1 }
 0x362   : > { %v1221_v5 = vmul.f32 %v2071_v37, %v1213_v0 }
 0x364   : > { %v1229_v6 = vmul.f32 %v2055_v25, %v1221_v5 }
 0x365   : > { %v2073_v7 = vpop.eup %2072 }
 0x366   : > { %v1315_v8 = vpack.c.bf16 %v1229_v6, %v1229_v6  ;;  %v1203_v9 = vmul.f32 %v2073_v7, %v1173_v63  ;;  %v2075_v10 = vpop.eup %2074  ;;  %v1235_v23 = vrot.slane %v1229_v6, 4 }
 0x367   : > { %v1206_v12 = vmul.f32 %v2075_v10, %v1182_v1  ;;  %v1176_v13 = vpop.xlane.xlu1 %1175 }
 0x368   : > { %v1211_v11 = vsub.f32 2.0, %v1203_v9  ;;  %1926 = vmatmul.msk.bf16.vlgmr.msrb.gmra.mxu1 %vm1303_vm7, %v1315_v8  ;;  %2076 = vrcp.f32 %v1176_v13 }
 0x369   : > { %v1214_v36 = vsub.f32 2.0, %v1206_v12 }
 0x36a   : > { %v1219_v30 = vmul.f32 %v2073_v7, %v1211_v11 }
 0x36b   : > { %v1222_v15 = vmul.f32 %v2075_v10, %v1214_v36 }
 0x36c   : > { %v1227_v14 = vmul.f32 %v2758_v38, %v1219_v30 }
 0x36d   : > { %v1230_v18 = vmul.f32 %v2763_v34, %v1222_v15 }
 0x36e   : > { %v1313_v17 = vpack.c.bf16 %v1227_v14, %v1227_v14  ;;  %v1185_v19 = vpop.xlane.xlu0 %1184  ;;  %v2077_v21 = vpop.eup %2076  ;;  %v1236_v31 = vsel %vm754_vm1, %v1235_v23, %v1227_v14 }
 0x36f   : > { %2078 = vrcp.f32 %v1185_v19  ;;  %v1194_v22 = vpop.xlane.xlu2 %1193  ;;  %v1316_v24 = vpack.c.bf16 %v1230_v18, %v1230_v18  ;;  %v1204_v25 = vmul.f32 %v2077_v21, %v1176_v13  ;;  %v1191_v28 = vpop.xlane.xlu1 %1190  ;;  %v1240_v2 = vperm.slane %v1236_v31, %v2651_v39 }
 0x370   : > { %2080 = vrcp.f32 %v1194_v22  ;;  %1924 = vmatmul.msk.bf16.vlgmr.msra.gmra.mxu3 %vm1303_vm7, %v1313_v17  ;;  %v1241_v38 = vrot.slane %v1230_v18, 4 }
 0x371   : > { %2082 = vrcp.f32 %v1191_v28  ;;  %v1212_v32 = vsub.f32 2.0, %v1204_v25  ;;  %1927 = vmatmul.msk.bf16.vlgmr.msrb.gmra.mxu2 %vm1303_vm7, %v1316_v24  ;;  %v1261_v49 = vrot.slane %v1240_v2, 4 }
 0x373   : > { %v1220_v26 = vmul.f32 %v2077_v21, %v1212_v32 }
 0x375   : > { %v2079_v33 = vpop.eup %2078  ;;  %v1228_v40 = vmul.f32 %v2767_v46, %v1220_v26 }
 0x376   : > { %v2081_v35 = vpop.eup %2080  ;;  %v1207_v29 = vmul.f32 %v2079_v33, %v1185_v19 }
 0x377   : > { %v2083_v34 = vpop.eup %2082  ;;  %v1210_v41 = vmul.f32 %v2081_v35, %v1194_v22  ;;  %v1188_v20 = vpop.xlane.xlu2 %1187  ;;  %v1242_v42 = vsel %vm754_vm1, %v1241_v38, %v1228_v40  ;;  %v1314_v43 = vpack.c.bf16 %v1228_v40, %v1228_v40 }
 0x378   : > { %v1215_v44 = vsub.f32 2.0, %v1207_v29  ;;  %v1209_v45 = vmul.f32 %v2083_v34, %v1191_v28  ;;  %v1246_v47 = vperm.slane %v1242_v42, %v2651_v39  ;;  %2084 = vrcp.f32 %v1188_v20 }
 0x379   : > { %v1218_v48 = vsub.f32 2.0, %v1210_v41  ;;  %1925 = vmatmul.msk.bf16.vlgmr.msrb.gmra.mxu0 %vm1303_vm7, %v1314_v43 }
 0x37a   : > { %v1223_v50 = vmul.f32 %v2079_v33, %v1215_v44  ;;  %v1217_v53 = vsub.f32 2.0, %v1209_v45  ;;  %v1262_v46 = vsel %vm754_vm1, %v1246_v47, %v1261_v49  ;;  %v1259_v4 = vrot.slane %v1246_v47, 4 }
 0x37b   : > { %v1226_v56 = vmul.f32 %v2081_v35, %v1218_v48  ;;  %v1270_v10 = vperm.slane %v1262_v46, %v2657_v52  ;;  %v1554_v35 = vld [vmem:[%s3032_s8 + $0x78] sm:$0xff] }
 0x37c   : > { %v1231_v57 = vmul.f32 %v2773_v54, %v1223_v50  ;;  %v1225_v58 = vmul.f32 %v2083_v34, %v1217_v53  ;;  %v1260_v7 = vsel %vm754_vm1, %v1259_v4, %v1240_v2  ;;  %1555 = vmatpush.msra.mxu3 %v1554_v35 }
 0x37d   : > { %v1234_v59 = vmul.f32 %v2775_v55, %v1226_v56  ;;  %v1266_v13 = vperm.slane %v1260_v7, %v2657_v52 }
 0x37e   : > { %v1317_v61 = vpack.c.bf16 %v1231_v57, %v1231_v57  ;;  %v1233_v62 = vmul.f32 %v2771_v51, %v1225_v58  ;;  %v2085_v37 = vpop.eup %2084 }
 0x37f   : > { %v1320_v16 = vpack.c.bf16 %v1234_v59, %v1234_v59  ;;  %v1208_v1 = vmul.f32 %v2085_v37, %v1188_v20  ;;  %v1253_v6 = vrot.slane %v1234_v59, 4  ;;  %v1285_v17 = vrot.slane %v1266_v13, 4 }
 0x380   : > { %v1247_v63 = vrot.slane %v1233_v62, 4  ;;  %v1319_v0 = vpack.c.bf16 %v1233_v62, %v1233_v62  ;;  %1928 = vmatmul.msk.bf16.vlgmr.msrb.gmra.mxu3 %vm1303_vm7, %v1317_v61 }
 0x381   : > { %v1216_v3 = vsub.f32 2.0, %v1208_v1  ;;  %1931 = vmatmul.msk.bf16.vlgmr.msra.gmra.mxu2 %vm1303_vm7, %v1320_v16 }
 0x382   : > { %1930 = vmatmul.msk.bf16.vlgmr.msra.gmra.mxu1 %vm1303_vm7, %v1319_v0  ;;  %v1248_v54 = vsel %vm754_vm1, %v1247_v63, %v1231_v57 }
 0x383   : > { %v1224_v5 = vmul.f32 %v2085_v37, %v1216_v3  ;;  %v1252_v55 = vperm.slane %v1248_v54, %v2651_v39 }
 0x385   : > { %v1232_v51 = vmul.f32 %v2783_v60, %v1224_v5  ;;  %v1273_v12 = vrot.slane %v1252_v55, 4  ;;  %v1289_v60 = vrot.slane %v1270_v10, 4 }
 0x387   : > { %v1254_v8 = vsel %vm754_vm1, %v1253_v6, %v1232_v51  ;;  %v1318_v9 = vpack.c.bf16 %v1232_v51, %v1232_v51 }
 0x388   : > { %v1258_v11 = vperm.slane %v1254_v8, %v2651_v39 }
 0x389   : > { %1929 = vmatmul.msk.bf16.vlgmr.msra.gmra.mxu0 %vm1303_vm7, %v1318_v9 }
 0x38a   : > { %v1271_v27 = vrot.slane %v1258_v11, 4  ;;  %v1274_v30 = vsel %vm754_vm1, %v1258_v11, %v1273_v12 }
 0x38b   : > { %v1282_v36 = vperm.slane %v1274_v30, %v2657_v52  ;;  %v1312_v30 = vld [vmem:[%s2581_s23 + $0x18] sm:$0xff] }
 0x38c   : > { %v1272_v14 = vsel %vm754_vm1, %v1271_v27, %v1252_v55  ;;  %v1551_v27 = vld [vmem:[%s3032_s8 + $0x60] sm:$0xff]  ;;  %1590 = vmatpush.msrb.mxu0 %v1312_v30 }
 0x38d   : > { %v1278_v15 = vperm.slane %v1272_v14, %v2657_v52  ;;  %v1287_v18 = vrot.slane %v1282_v36, 4  ;;  %v1290_v19 = vsel %vm754_vm1, %v1282_v36, %v1289_v60  ;;  %v1550_v36 = vld [vmem:[%s3032_s8 + $0x58] sm:$0xff]  ;;  %v1311_v60 = vld [vmem:[%s2581_s23 + $0x10] sm:$0xff] }
 0x38e   : > { %v1549_v14 = vld [vmem:[%s3032_s8 + $0x50] sm:$0xff]  ;;  %1591 = vmatpush.msrb.mxu0 %v1311_v60 }
 0x38f   : > { %v1286_v21 = vsel %vm754_vm1, %v1278_v15, %v1285_v17  ;;  %v1283_v22 = vrot.slane %v1278_v15, 4  ;;  %v1288_v23 = vsel %vm754_vm1, %v1287_v18, %v1270_v10  ;;  %v1548_v15 = vld [vmem:[%s3032_s8 + $0x48] sm:$0xff]  ;;  %v1547_v17 = vld [vmem:[%s3032_s8 + $0x40] sm:$0xff]  ;;  %v1546_v18 = vld [vmem:[%s3032_s8 + $0x38] sm:$0xff] }
 0x390   : > { %1292 = vrot.lane.b32.xlu0 %v1286_v21, %s2348_s14  ;;  %v1544_v21 = vld [vmem:[%s3032_s8 + $0x28] sm:$0xff]  ;;  %s3034_s14 = sld [smem:[#allocation31_spill]] }
 0x391   : > { %v2828_v24 = vsel %vm754_vm1, %v1283_v22, %v1266_v13  ;;  %v1552_v13 = vld [vmem:[%s3032_s8 + $0x68] sm:$0xff]  ;;  %v1543_v22 = vld [vmem:[%s3032_s8 + $0x20] sm:$0xff] }
 0x3e5   : > { %v1372_v25 = vpop.f32.mrf.mxu1 }
 0x3e6   : > { %v1466_v33 = vrot.slane %v1372_v25, 4  ;;  %v1541_v25 = vld [vmem:[%s3032_s8 + $0x10] sm:$0xff] }
 0x3ed   : > { %v1374_v28 = vpop.f32.mrf.mxu1 }
 0x3ee   : > { %v1540_v28 = vld [vmem:[%s3032_s8 + $0x8] sm:$0xff] }
 0x3f3   : > { %v1336_v31 = vpop.f32.mrf.mxu3 }
 0x3f4   : > { %v1390_v32 = vpop.f32.mrf.mxu2  ;;  %v1467_v38 = vsel %vm754_vm1, %v1466_v33, %v1336_v31  ;;  %v1539_v31 = vld [vmem:[%s3032_s8] sm:$0xff] }
 0x3f5   : > { %v1472_v2 = vrot.slane %v1390_v32, 4  ;;  %v1471_v34 = vperm.slane %v1467_v38, %v2651_v39  ;;  %v1310_v32 = vld [vmem:[%s2581_s23 + $0x8] sm:$0xff] }
 0x3f6   : > { %v1354_v26 = vpop.f32.mrf.mxu0  ;;  %1592 = vmatpush.msrb.mxu0 %v1310_v32 }
 0x3f7   : > { %v1473_v29 = vsel %vm754_vm1, %v1472_v2, %v1354_v26  ;;  %v1492_v44 = vrot.slane %v1471_v34, 4  ;;  %v1309_v26 = vld [vmem:[%s2581_s23] sm:$0xff] }
 0x3f8   : > { %v1477_v20 = vperm.slane %v1473_v29, %v2651_v39  ;;  %1593 = vmatpush.msrb.mxu0 %v1309_v26 }
 0x3fa   : > { %v1490_v47 = vrot.slane %v1477_v20, 4  ;;  %v1493_v50 = vsel %vm754_vm1, %v1477_v20, %v1492_v44 }
 0x3fb   : > { %v1338_v40 = vpop.f32.mrf.mxu3  ;;  %v1501_v37 = vperm.slane %v1493_v50, %v2657_v52 }
 0x3fc   : > { %v1392_v41 = vpop.f32.mrf.mxu2  ;;  %v1491_v61 = vsel %vm754_vm1, %v1490_v47, %v1471_v34 }
 0x3fd   : > { %v1497_v63 = vperm.slane %v1491_v61, %v2657_v52  ;;  %v1520_v4 = vrot.slane %v1501_v37, 4 }
 0x3fe   : > { %v1356_v42 = vpop.f32.mrf.mxu0 }
 0x3ff   : > { %v1444_v43 = vpop.f32.mrf.mxu1  ;;  %v1516_v8 = vrot.slane %v1497_v63, 4 }
 0x400   : > { %v1478_v45 = vrot.slane %v1444_v43, 4 }
 0x402   : > { %v1293_v33 = vpop.permute.xlu0 %1292 }
 0x403   : > { %v1408_v48 = vpop.f32.mrf.mxu3  ;;  %v1304_v41 = vsel %vm1303_vm7, %v2828_v24, %v1293_v33 }
 0x404   : > { %v1479_v49 = vsel %vm754_vm1, %v1478_v45, %v1408_v48  ;;  %v1462_v56 = vpop.f32.mrf.mxu2 }
 0x405   : > { %v1483_v53 = vperm.slane %v1479_v49, %v2651_v39  ;;  %v1484_v46 = vrot.slane %v1462_v56, 4  ;;  %v2092_v49 = vld [vmem:[%s557_s6] sm:$0xff]  ;;  %v2351_v56 = vmov 32.0   ;;  %s2257_s6 = sshra.s32 %s1716_s28, 4  ;;  %s2258_s6 = int_to_ptr.hbm [resolvable:$true] %s2257_s6 }
 0x406   : > { %v1426_v58 = vpop.f32.mrf.mxu0  ;;  %2086 = vrcp.f32 %v2351_v56  ;;  %s2259_s23 = scalar_lea.hbm %s2258_s6, 8  ;;  %p2264_p8 = scmp.lt.s32.totalorder %s2258_s6, %s3036_s26 }
 0x407   : > { %v1504_v57 = vrot.slane %v1483_v53, 4  ;;  %v1446_v59 = vpop.f32.mrf.mxu1  ;;  %v1485_v62 = vsel %vm754_vm1, %v1484_v46, %v1426_v58  ;;  %p2260_p1 = scmp.ne.s32.totalorder %s2258_s6, %s2259_s23  ;;  %p2265_p10 = scmp.lt.s32.totalorder %s2263_s9, %s2259_s23 }
 0x408   : > { %v1489_v16 = vperm.slane %v1485_v62, %v2651_v39 }
 0x409   : > { %p2261_p5 = pnand %p2260_p1, %p2507_p4  ;;  %p2266_p11 = por %p2265_p10, %p2264_p8 }
 0x40a   : > { %v1502_v0 = vrot.slane %v1489_v16, 4  ;;  %v1505_v3 = vsel %vm754_vm1, %v1489_v16, %v1504_v57 }
 0x40b   : > { %v1410_v1 = vpop.f32.mrf.mxu3  ;;  %v1513_v54 = vperm.slane %v1505_v3, %v2657_v52  ;;  %v1640_v3 = vld [vmem:[#allocation10 + $0x10] sm:$0xff]  ;;  %p2262_p6 = pneg %p2261_p5 }
 0x40c   : > { %v1464_v5 = vpop.f32.mrf.mxu2  ;;  %v1503_v55 = vsel %vm754_vm1, %v1502_v0, %v1483_v53  ;;  %v2087_v46 = vpop.eup %2086  ;;  %v1641_v1 = vld [vmem:[#allocation10 + $0x18] sm:$0xff] }
 0x40d   : > { %v1521_v6 = vsel %vm754_vm1, %v1513_v54, %v1520_v4  ;;  %v1518_v51 = vrot.slane %v1513_v54, 4  ;;  %v1509_v7 = vperm.slane %v1503_v55, %v2657_v52  ;;  %v1553_v52 = vld [vmem:[%s3032_s8 + $0x70] sm:$0xff]  ;;  %v1605_v57 = vmul.f32 32.0, %v2087_v46  ;;  %1657 = vmatpush.msrb.mxu1 %v1641_v1  ;;  %v1639_v54 = vld [vmem:[#allocation10 + $0x8] sm:$0xff]  ;;  %v1638_v4 = vld [vmem:[#allocation10] sm:$0xff]  ;;  %p2267_p12 = pnand %p2266_p11, %p2262_p6 }
 0x40e   : > { %v1428_v9 = vpop.f32.mrf.mxu0  ;;  %1531 = vrot.lane.b32.xlu2 %v1521_v6, %s2340_s11  ;;  %1556 = vmatpush.msra.mxu3 %v1553_v52  ;;  %vm1609_vm10 = vweird.f32 %v2087_v46 }
 0x40f   : > { %v1519_v39 = vsel %vm754_vm1, %v1518_v51, %v1501_v37  ;;  %v1514_v10 = vrot.slane %v1509_v7, 4  ;;  %v1517_v11 = vsel %vm754_vm1, %v1509_v7, %v1516_v8  ;;  %v1606_v24 = vsub.f32 1.0, %v1605_v57  ;;  %1658 = vmatpush.msrb.mxu1 %v1640_v3 }
 0x410   : > { %1527 = vrot.lane.b32.xlu1 %v1519_v39, %s2341_s18  ;;  %1523 = vrot.lane.b32.xlu0 %v1517_v11, %s2343_s24  ;;  %v2050_v11 = vld [vmem:[%s3033_s25] ss:$0 sm:$0xff]  ;;  %s1713_s24 = sshll.u32 %s656_s16, 4  ;;  %s1714_s24 = int_to_ptr.vmem [resolvable:$true] %s1713_s24 }
 0x411   : > { %v1515_v12 = vsel %vm754_vm1, %v1514_v10, %v1497_v63  ;;  %1557 = vmatpush.msra.mxu3 %v1552_v13  ;;  %vm1535_vm1 = vcmask 523264   ;;  %v1607_v58 = vmul.f32 %v2087_v46, %v1606_v24  ;;  %1659 = vmatpush.msrb.mxu1 %v1639_v54  ;;  %v2051_v13 = vld [vmem:[%s3034_s14] ss:$0 sm:$0xff] }
 0x413   : > { %1558 = vmatpush.msra.mxu3 %v1551_v27  ;;  %v1608_v59 = vadd.f32 %v2087_v46, %v1607_v58  ;;  %1660 = vmatpush.msrb.mxu1 %v1638_v4 }
 0x415   : > { %1559 = vmatpush.msra.mxu3 %v1550_v36  ;;  %v1610_v61 = vsel %vm1609_vm10, %v2087_v46, %v1608_v59 }
 0x417   : > { %1560 = vmatpush.msra.mxu3 %v1549_v14 }
 0x418   : > { %1296 = vrot.lane.b32.xlu1 %v1288_v23, %s2349_s10  ;;  %1300 = vrot.lane.b32.xlu0 %v1290_v19, %s2350_s7  ;;  %v1545_v19 = vld [vmem:[%s3032_s8 + $0x30] sm:$0xff]  ;;  %v1542_v23 = vld [vmem:[%s3032_s8 + $0x18] sm:$0xff]  ;;  %s3035_s7 = sld [smem:[#allocation32_spill]] }
 0x419   : > { %1561 = vmatpush.msra.mxu3 %v1548_v15 }
 0x41b   : > { %1562 = vmatpush.msra.mxu3 %v1547_v17 }
 0x41d   : > { %1563 = vmatpush.msra.mxu3 %v1546_v18 }
 0x41f   : > { %1564 = vmatpush.msra.mxu3 %v1545_v19 }
 0x421   : > { %1565 = vmatpush.msra.mxu3 %v1544_v21 }
 0x423   : > { %1566 = vmatpush.msra.mxu3 %v1543_v22 }
 0x425   : > { %1567 = vmatpush.msra.mxu3 %v1542_v23 }
 0x427   : > { %1568 = vmatpush.msra.mxu3 %v1541_v25 }
 0x429   : > { %1569 = vmatpush.msra.mxu3 %v1540_v28 }
 0x42b   : > { %1570 = vmatpush.msra.mxu3 %v1539_v31 }
 0x468   : > { %v1532_v40 = vpop.permute.xlu2 %1531 }
 0x482   : > { %v1528_v2 = vpop.permute.xlu1 %1527  ;;  %v1524_v35 = vpop.permute.xlu0 %1523 }
 0x483   : > { %v1534_v38 = vsel %vm692_vm0, %v1515_v12, %v1524_v35  ;;  %v2052_v35 = vld [vmem:[%s3035_s7] ss:$0 sm:$0xff] }
 0x484   : > { %v1536_v29 = vsel %vm1535_vm1, %v1534_v38, %v1528_v2 }
 0x485   : > { %v1538_v34 = vsel %vm1537_vm2, %v1536_v29, %v1532_v40  ;;  %v2053_v29 = vld [vmem:[%s3038_s22] ss:$0 sm:$0xff] }
 0x486   : > { %1571 = vmatmul.f32.vlgmr.msra.gmra.mxu3 %v1538_v34 }
 0x48a   : > { %v1297_v20 = vpop.permute.xlu1 %1296  ;;  %v1301_v42 = vpop.permute.xlu0 %1300 }
 0x48b   : > { %v1306_v43 = vsel %vm1305_vm8, %v1304_v41, %v1297_v20 }
 0x48c   : > { %v1308_v44 = vsel %vm1307_vm9, %v1306_v43, %v1301_v42 }
 0x48d   : > { %1932 = vmatmul.msk.f32.vlgmr.msrb.gmra.mxu0 %vm692_vm0, %v1308_v44 }
 0x509   : > { %v1572_v45 = vpop.f32.mrf.mxu3 }
 0x50a   : > { %v1595_v47 = vpop.f32.mrf.mxu0 }
 0x50b   : > { %v1596_v48 = vadd.f32 %v1595_v47, %v1572_v45 }
 0x50d   : > { %v1598_v50 = vadd.f32 %v2092_v49, %v1596_v48 }
 0x50f   : > { %v1601_v53 = vsel %vm692_vm0, %v1598_v50, 0.0 }
 0x510   : > { %1602 = vadd.xlane.f32.xlu2 %v1601_v53 }
 0x583   : > { %v1603_v62 = vpop.xlane.xlu2 %1602 }
 0x584   : > { %v1611_v37 = vmul.f32 %v1610_v61, %v1603_v62 }
 0x586   : > { %v1612_v16 = vsub.f32 %v1598_v50, %v1611_v37 }
 0x588   : > { %v1613_v63 = vmul.f32 %v1612_v16, %v1612_v16 }
 0x58a   : > { %v1614_v0 = vsel %vm692_vm0, %v1613_v63, 0.0 }
 0x58b   : > { %1615 = vadd.xlane.f32.xlu1 %v1614_v0 }
 0x5fe   : > { %v1616_v5 = vpop.xlane.xlu1 %1615 }
 0x5ff   : > { %v1617_v55 = vmul.f32 %v1616_v5, %v1610_v61 }
 0x601   : > { %v1618_v6 = vadd.f32 1e-05, %v1617_v55 }
 0x603   : > { %2088 = vrsqrt.f32 %v1618_v6  ;;  %vm1625_vm12 = vweird.f32 %v1618_v6 }
 0x609   : > { %v2089_v51 = vpop.eup %2088 }
 0x60a   : > { %v1620_v7 = vmul.f32 %v2089_v51, %v1618_v6  ;;  %vm1626_vm11 = vweird.f32 %v2089_v51 }
 0x60b   : > { %vm1627_vm13 = vmor %vm1625_vm12, %vm1626_vm11 }
 0x60c   : > { %v1621_v8 = vmul.f32 %v2089_v51, %v1620_v7 }
 0x60e   : > { %v1622_v9 = vmul.f32 0.5, %v1621_v8 }
 0x610   : > { %v1623_v39 = vsub.f32 1.5, %v1622_v9 }
 0x612   : > { %v1624_v10 = vmul.f32 %v2089_v51, %v1623_v39 }
 0x614   : > { %v1628_v12 = vsel %vm1627_vm13, %v2089_v51, %v1624_v10 }
 0x615   : > { %v1629_v52 = vmul.f32 %v1628_v12, %v1612_v16 }
 0x617   : > { %v1633_v27 = vmul.f32 %v2050_v11, %v1629_v52 }
 0x619   : > { %v1637_v30 = vadd.f32 %v2051_v13, %v1633_v27 }
 0x61b   : > { %1933 = vmatmul.msk.f32.vlgmr.msrb.gmra.mxu1 %vm692_vm0, %v1637_v30 }
 0x698   : > { %v1662_v36 = vpop.f32.mrf.mxu1 }
 0x699   : > { %v1665_v60 = vadd.f32 %v1662_v36, %v1637_v30 }
 0x69b   : > { %v1668_v14 = vsel %vm692_vm0, %v1665_v60, 0.0 }
 0x69c   : > { %1669 = vadd.xlane.f32.xlu0 %v1668_v14 }
 0x70f   : > { %v1670_v15 = vpop.xlane.xlu0 %1669 }
 0x710   : > { %v1671_v17 = vmul.f32 %v1670_v15, %v1610_v61 }
 0x712   : > { %v1672_v18 = vsub.f32 %v1665_v60, %v1671_v17 }
 0x714   : > { %v1673_v19 = vmul.f32 %v1672_v18, %v1672_v18 }
 0x716   : > { %v1674_v21 = vsel %vm692_vm0, %v1673_v19, 0.0 }
 0x717   : > { %1675 = vadd.xlane.f32.xlu2 %v1674_v21 }
 0x78a   : > { %v1676_v22 = vpop.xlane.xlu2 %1675 }
 0x78b   : > { %v1677_v23 = vmul.f32 %v1676_v22, %v1610_v61 }
 0x78d   : > { %v1678_v25 = vadd.f32 1e-05, %v1677_v23 }
 0x78f   : > { %2090 = vrsqrt.f32 %v1678_v25  ;;  %vm1685_vm15 = vweird.f32 %v1678_v25 }
 0x795   : > { %v2091_v28 = vpop.eup %2090 }
 0x796   : > { %v1680_v31 = vmul.f32 %v2091_v28, %v1678_v25  ;;  %vm1686_vm14 = vweird.f32 %v2091_v28 }
 0x797   : > { %vm1687_vm3 = vmor %vm1685_vm15, %vm1686_vm14 }
 0x798   : > { %v1681_v32 = vmul.f32 %v2091_v28, %v1680_v31 }
 0x79a   : > { %v1682_v26 = vmul.f32 0.5, %v1681_v32 }
 0x79c   : > { %v1683_v33 = vsub.f32 1.5, %v1682_v26 }
 0x79e   : > { %v1684_v2 = vmul.f32 %v2091_v28, %v1683_v33 }
 0x7a0   : > { %v1688_v38 = vsel %vm1687_vm3, %v2091_v28, %v1684_v2 }
 0x7a1   : > { %v1689_v40 = vmul.f32 %v1688_v38, %v1672_v18 }
 0x7a3   : > { %v1693_v34 = vmul.f32 %v2052_v35, %v1689_v40 }
 0x7a5   : > { %v1697_v41 = vadd.f32 %v2053_v29, %v1693_v34 }
 0x7a7   : > { %1698 = vst.msk [vmem:[%s656_s16] sm:$0xff] %vm692_vm0, %v1697_v41 }
 0x7a8   : > { %2270 = shalt.err (!%p2267_p12)
}
 0x7a9   : > { %1955 = dma.vmem_to_hbm [thread:$0]  (%p2507_p4), %s1714_s24, 128, %s1716_s28, %s1700_s29  }
 0x7aa PF: > { %s3039_s1 = sld [smem:[#allocation16_spill]] }
 0x7ab   : > { %s3041_s20 = sld [smem:[#allocation18_spill]] }
 0x7b0   : > { %s1727_s10 = sand.u32 1, %s3039_s1  }
 0x7b1   : > { %p3042_p13 = scmp.ge.s32.totalorder %s3041_s20, 2  ;;  %s1728_s7 = scalar_lea.sflag [#allocation4], %s1727_s10 }
 0x7b3   : > { %p1975_p0 = pnand %p3042_p13, %p2515_p9 }
 0x7b5   : > { %p1976_p2 = pneg %p1975_p0 }
 0x7b7   : > { %2308 = dma.done.wait (%p1976_p2), %s1728_s7, 128  }
 0x7b8   : > { %2310 = vsyncadd (%p1976_p2), %s1728_s7, 4294967168  ;;  %s34_s18 = sadd.s32 1, %s3041_s20   ;;  %s3043_s2 = sld [smem:[#allocation17_spill]] }
 0x7b9   : > { %p31_p7 = scmp.ge.s32.totalorder %s34_s18, 4   ;;  %s3044_s15 = sld [smem:[#allocation21_spill]] }
 0x7ba   : > { %s3045_s27 = sld [smem:[#allocation19_spill]]  ;;  %s3046_s29 = smov %s2317_s30 }
 0x7bb   : > { %s3048_s16 = smov %s2329_s17 }
 0x7bc   :  { %33 = sbr.rel (!%p31_p7) target bundleno = 22 (0x16), region = 159 }
 0x7be   : > { %s3047_s30 = smov %s3043_s2 }
 0x7c0   : > { %s3049_s17 = smov %s3045_s27 }
 0x7c1   :  { %1734 = vsyncpa [#allocation3], 1 }
 0x7c2   :  { %1736 = vsyncpa [#allocation3 + $0x1], 1 }
 0x7c3   :  { %1737 = vsyncpa [#allocation6], 1 }
 0x7c4   :  { %1739 = vsyncpa [#allocation6 + $0x1], 1 }
 0x7c5   :  { %1740 = vsyncpa [#allocation9], 1 }
 0x7c6   :  { %1741 = vsyncpa [#allocation4], 1 }
 0x7c7   :  { %1743 = vsyncpa [#allocation4 + $0x1], 1 }

</bundles_post_ra>
